<compile_context>
chip_gen: v7x
topology: tpu7x:2x2x1
jax: 0.10.0
libtpu: 0.0.40
codegen_flags: <defaults>
</compile_context>

<pallas_src>
import functools

import jax
import jax.numpy as jnp
from jax import lax
from jax.experimental import pallas as pl
from jax.experimental.pallas import tpu as pltpu


# ---------------------------------------------------------------- kernel -----
def _fused_kernel(x_ref, m1_ref, b1v_ref, m2_ref, b2v_ref,
                  w1_ref, b1_ref, w3_ref, b3_ref, out_ref):
    """conv1+tanh -> conv2+tanh -> fc1+tanh -> fc3, fully fused.

    Both 'same' convolutions were pre-folded into dense matrices (M1, M2) by
    prepare_params(), so every layer is a plain MXU matmul and all
    intermediate activations stay on-chip.
    """
    x = x_ref[...]                                                       # (tb, 64)
    a1 = jnp.tanh(jnp.dot(x, m1_ref[...],
                          preferred_element_type=jnp.float32) + b1v_ref[...])   # (tb, 480)
    a2 = jnp.tanh(jnp.dot(a1, m2_ref[...],
                          preferred_element_type=jnp.float32) + b2v_ref[...])   # (tb, 256)
    h = jnp.tanh(jnp.dot(a2, w1_ref[...],
                         preferred_element_type=jnp.float32) + b1_ref[...])     # (tb, 1024)
    out = jnp.dot(h, w3_ref[...],
                  preferred_element_type=jnp.float32) + b3_ref[...]             # (tb, 128)
    out_ref[...] = out.astype(out_ref.dtype)


# ------------------------------------------------------- one-time weight prep
def prepare_params(params, *, n_R=4, n_T=8, T=8, filt_size=3, num_channel=8,
                   out_pad=128):
    """Hoisted parameter preprocessing (runs once, NOT in the forward path).

    Folds both 'same' convs into dense matrices and lays every weight out for
    the fused kernel. Pure layout work on constants.
    """
    wc1, bc1, wc2, bc2, w1, b1, w3, b3 = params
    K = filt_size
    C = num_channel
    Cin = wc1.shape[1]
    H, W = n_R, T
    Hp, Wp = H + 2, W + 2                       # zero-padded spatial extents
    out_dim = 2 * n_R * n_T + 2
    assert out_dim <= out_pad

    # --- conv1 as a dense matrix: raw NCHW flatten (Cin*H*W) -> padded NHWC
    # layout (Hp*Wp*C). Border columns get zero weights AND zero bias, so
    # tanh(border)=0 exactly and the activation carries conv2's zero padding.
    r = jnp.arange(Cin * H * W)
    ci, hi, wi = r // (H * W), (r // W) % H, r % W
    c = jnp.arange(Hp * Wp * C)
    hp, wp, co = c // (Wp * C), (c // C) % Wp, c % C
    kh = hi[:, None] - hp[None, :] + 2          # h = hp-1, hi = h + kh - 1
    kw = wi[:, None] - wp[None, :] + 2
    interior = (hp >= 1) & (hp <= H) & (wp >= 1) & (wp <= W)
    valid = interior[None, :] & (kh >= 0) & (kh < K) & (kw >= 0) & (kw < K)
    w_gather = wc1[co[None, :], ci[:, None],
                   jnp.clip(kh, 0, K - 1), jnp.clip(kw, 0, K - 1)]
    m1 = jnp.where(valid, w_gather, 0.0).astype(jnp.float32)             # (64, 480)
    b1v = jnp.where(interior, bc1[co], 0.0).reshape(1, Hp * Wp * C)

    # --- conv2 as a dense matrix: padded NHWC (Hp*Wp*C) -> PyTorch flatten
    # order (C*H*W), so fc1 weights need no permutation afterwards.
    r2 = jnp.arange(Hp * Wp * C)
    hp2, wp2, c1 = r2 // (Wp * C), (r2 // C) % Wp, r2 % C
    c2 = jnp.arange(C * H * W)
    co2, h2, w2 = c2 // (H * W), (c2 // W) % H, c2 % W
    kh2 = hp2[:, None] - h2[None, :]            # padded row used: hp = h + kh
    kw2 = wp2[:, None] - w2[None, :]
    valid2 = (kh2 >= 0) & (kh2 < K) & (kw2 >= 0) & (kw2 < K)
    w2_gather = wc2[co2[None, :], c1[:, None],
                    jnp.clip(kh2, 0, K - 1), jnp.clip(kw2, 0, K - 1)]
    m2 = jnp.where(valid2, w2_gather, 0.0).astype(jnp.float32)           # (480, 256)
    b2v = bc2[co2].reshape(1, C * H * W).astype(jnp.float32)

    # --- fully connected layers; fc3 zero-padded to a lane-dense 128 lanes.
    w1m = w1.T                                                           # (256, 1024)
    b1m = b1.reshape(1, -1)
    w3m = jnp.zeros((w3.shape[1], out_pad), jnp.float32).at[:, :out_dim].set(w3.T)
    b3m = jnp.zeros((1, out_pad), jnp.float32).at[:, :out_dim].set(b3)

    return (m1, b1v, m2, b2v, w1m, b1m, w3m, b3m)


# ------------------------------------------------------------- host wrapper --
def cnn2ch_2cv_forward(x, prep, *, out_dim=66, max_batch_tile=128):
    """Fused forward pass. `prep` comes from prepare_params() (call once)."""
    m1, b1v, m2, b2v, w1m, b1m, w3m, b3m = prep
    B = x.shape[0]
    in_dim = x.shape[1] * x.shape[2] * x.shape[3]
    out_pad = w3m.shape[1]

    x_flat = x.reshape(B, in_dim)               # NCHW flatten, matches M1 rows

    # Batch tiling: full block for small B; 128-row tiles (pipelined, parallel
    # across v7x TensorCores) for large B. Weights use a constant index_map so
    # they stay VMEM-resident across tiles.
    tb = B if B <= max_batch_tile else max_batch_tile
    Bp = ((B + tb - 1) // tb) * tb
    if Bp != B:
        x_flat = jnp.pad(x_flat, ((0, Bp - B), (0, 0)))

    def full_block(a):
        return pl.BlockSpec(a.shape, lambda i: (0, 0))

    out = pl.pallas_call(
        _fused_kernel,
        out_shape=jax.ShapeDtypeStruct((Bp, out_pad), jnp.float32),
        grid=(Bp // tb,),
        in_specs=[pl.BlockSpec((tb, in_dim), lambda i: (i, 0)),
                  full_block(m1), full_block(b1v),
                  full_block(m2), full_block(b2v),
                  full_block(w1m), full_block(b1m),
                  full_block(w3m), full_block(b3m)],
        out_specs=pl.BlockSpec((tb, out_pad), lambda i: (i, 0)),
        compiler_params=pltpu.CompilerParams(
            dimension_semantics=("parallel",)),
    )(x_flat, m1, b1v, m2, b2v, w1m, b1m, w3m, b3m)

    return out[:B, :out_dim]


# --------------------------------------------------------- pure-JAX reference -
def cnn2ch_2cv_reference(x, params):
    wc1, bc1, wc2, bc2, w1, b1, w3, b3 = params
    dn = ("NCHW", "OIHW", "NCHW")
    hp = lax.Precision.HIGHEST
    o = lax.conv_general_dilated(x, wc1, (1, 1), "SAME",
                                 dimension_numbers=dn, precision=hp)
    o = jnp.tanh(o + bc1.reshape(1, -1, 1, 1))
    o = lax.conv_general_dilated(o, wc2, (1, 1), "SAME",
                                 dimension_numbers=dn, precision=hp)
    o = jnp.tanh(o + bc2.reshape(1, -1, 1, 1))
    f = o.reshape(x.shape[0], -1)               # (B, C*H*W), torch flatten order
    h = jnp.tanh(jnp.dot(f, w1.T, precision=hp) + b1)
    return jnp.dot(h, w3.T, precision=hp) + b3


# ------------------------------------------------------------------- main ----
if __name__ == "__main__":
    # module hyper-parameters (defaults of the PyTorch module)
    n_R, n_T, T, filt_size, num_channel = 4, 8, 8, 3, 8
    B = 2
    fc_in = num_channel * n_R * T                       # 256
    out_dim = 2 * n_R * n_T + 2                         # 66

    key = jax.random.PRNGKey(0)
    kx, k0, k1, k2, k3, k4, k5, k6, k7 = jax.random.split(key, 9)

    # deterministic synthetic parameters (PyTorch-shaped)
    wc1 = jax.random.normal(k0, (num_channel, 2, filt_size, filt_size), jnp.float32) * 0.1
    bc1 = jax.random.normal(k1, (num_channel,), jnp.float32) * 0.1
    wc2 = jax.random.normal(k2, (num_channel, num_channel, filt_size, filt_size), jnp.float32) * 0.1
    bc2 = jax.random.normal(k3, (num_channel,), jnp.float32) * 0.1
    w1 = jax.random.normal(k4, (1024, fc_in), jnp.float32) * 0.05
    b1 = jax.random.normal(k5, (1024,), jnp.float32) * 0.05
    w3 = jax.random.normal(k6, (out_dim, 1024), jnp.float32) * 0.05
    b3 = jax.random.normal(k7, (out_dim,), jnp.float32) * 0.05
    params = (wc1, bc1, wc2, bc2, w1, b1, w3, b3)

    # input: (B, 2, n_R, T) NCHW, same as the PyTorch module expects
    x = jax.random.normal(kx, (B, 2, n_R, T), jnp.float32)

    # one-time weight prep (hoisted out of the forward path)
    prep = prepare_params(params, n_R=n_R, n_T=n_T, T=T,
                          filt_size=filt_size, num_channel=num_channel)

    fwd = jax.jit(functools.partial(cnn2ch_2cv_forward, out_dim=out_dim))
    out = jax.block_until_ready(fwd(x, prep))
    ref = jax.block_until_ready(cnn2ch_2cv_reference(x, params))

    assert out.shape == (B, out_dim), out.shape
    max_err = float(jnp.max(jnp.abs(out - ref)))
    assert jnp.allclose(out, ref, rtol=1e-4, atol=1e-4), f"max abs err = {max_err}"

    print("KERNEL_OK")
</pallas_src>

<mosaic_0001>
module attributes {stable_mosaic.version = 11 : i64} {
  func.func @_fused_kernel(%arg0: i32, %arg1: memref<2x64xf32, #tpu.memory_space<vmem>>, %arg2: memref<64x480xf32, #tpu.memory_space<vmem>>, %arg3: memref<1x480xf32, #tpu.memory_space<vmem>>, %arg4: memref<480x256xf32, #tpu.memory_space<vmem>>, %arg5: memref<1x256xf32, #tpu.memory_space<vmem>>, %arg6: memref<256x1024xf32, #tpu.memory_space<vmem>>, %arg7: memref<1x1024xf32, #tpu.memory_space<vmem>>, %arg8: memref<1024x128xf32, #tpu.memory_space<vmem>>, %arg9: memref<1x128xf32, #tpu.memory_space<vmem>>, %arg10: memref<2x128xf32, #tpu.memory_space<vmem>>) attributes {dimension_semantics = [#tpu.dimension_semantics<parallel>], iteration_bounds = array<i64: 1>, scalar_prefetch = 0 : i64, scratch_operands = 0 : i64, tpu.core_type = #tpu.core_type<tc>, window_params = [{transform_indices = @transform_0, window_bounds = array<i64: 2, 64>}, {pipeline_mode = #tpu.pipeline_mode<synchronous>, transform_indices = @transform_1, window_bounds = array<i64: 64, 480>}, {pipeline_mode = #tpu.pipeline_mode<synchronous>, transform_indices = @transform_2, window_bounds = array<i64: 1, 480>}, {pipeline_mode = #tpu.pipeline_mode<synchronous>, transform_indices = @transform_3, window_bounds = array<i64: 480, 256>}, {pipeline_mode = #tpu.pipeline_mode<synchronous>, transform_indices = @transform_4, window_bounds = array<i64: 1, 256>}, {pipeline_mode = #tpu.pipeline_mode<synchronous>, transform_indices = @transform_5, window_bounds = array<i64: 256, 1024>}, {pipeline_mode = #tpu.pipeline_mode<synchronous>, transform_indices = @transform_6, window_bounds = array<i64: 1, 1024>}, {pipeline_mode = #tpu.pipeline_mode<synchronous>, transform_indices = @transform_7, window_bounds = array<i64: 1024, 128>}, {pipeline_mode = #tpu.pipeline_mode<synchronous>, transform_indices = @transform_8, window_bounds = array<i64: 1, 128>}, {transform_indices = @transform_9, window_bounds = array<i64: 2, 128>}]} {
    %c0 = arith.constant 0 : index
    %c0_0 = arith.constant 0 : index
    %0 = vector.load %arg1[%c0, %c0_0] : memref<2x64xf32, #tpu.memory_space<vmem>>, vector<2x64xf32>
    %c0_1 = arith.constant 0 : index
    %c0_2 = arith.constant 0 : index
    %1 = vector.load %arg2[%c0_1, %c0_2] : memref<64x480xf32, #tpu.memory_space<vmem>>, vector<64x480xf32>
    %cst = arith.constant dense<0.000000e+00> : vector<2x480xf32>
    %2 = tpu.matmul %0, %1, %cst {dimension_numbers = #tpu.dot_dimension_numbers<[1], [0], [0], [1], [0, 0, 1, 1], [], []>} : vector<2x64xf32>, vector<64x480xf32>, vector<2x480xf32> -> vector<2x480xf32>
    %c0_3 = arith.constant 0 : index
    %c0_4 = arith.constant 0 : index
    %3 = vector.load %arg3[%c0_3, %c0_4] : memref<1x480xf32, #tpu.memory_space<vmem>>, vector<1x480xf32>
    %4 = vector.broadcast %3 : vector<1x480xf32> to vector<2x480xf32>
    %5 = arith.addf %2, %4 : vector<2x480xf32>
    %6 = math.tanh %5 : vector<2x480xf32>
    %c0_5 = arith.constant 0 : index
    %c0_6 = arith.constant 0 : index
    %7 = vector.load %arg4[%c0_5, %c0_6] : memref<480x256xf32, #tpu.memory_space<vmem>>, vector<480x256xf32>
    %cst_7 = arith.constant dense<0.000000e+00> : vector<2x256xf32>
    %8 = tpu.matmul %6, %7, %cst_7 {dimension_numbers = #tpu.dot_dimension_numbers<[1], [0], [0], [1], [0, 0, 1, 1], [], []>} : vector<2x480xf32>, vector<480x256xf32>, vector<2x256xf32> -> vector<2x256xf32>
    %c0_8 = arith.constant 0 : index
    %c0_9 = arith.constant 0 : index
    %9 = vector.load %arg5[%c0_8, %c0_9] : memref<1x256xf32, #tpu.memory_space<vmem>>, vector<1x256xf32>
    %10 = vector.broadcast %9 : vector<1x256xf32> to vector<2x256xf32>
    %11 = arith.addf %8, %10 : vector<2x256xf32>
    %12 = math.tanh %11 : vector<2x256xf32>
    %c0_10 = arith.constant 0 : index
    %c0_11 = arith.constant 0 : index
    %13 = vector.load %arg6[%c0_10, %c0_11] : memref<256x1024xf32, #tpu.memory_space<vmem>>, vector<256x1024xf32>
    %cst_12 = arith.constant dense<0.000000e+00> : vector<2x1024xf32>
    %14 = tpu.matmul %12, %13, %cst_12 {dimension_numbers = #tpu.dot_dimension_numbers<[1], [0], [0], [1], [0, 0, 1, 1], [], []>} : vector<2x256xf32>, vector<256x1024xf32>, vector<2x1024xf32> -> vector<2x1024xf32>
    %c0_13 = arith.constant 0 : index
    %c0_14 = arith.constant 0 : index
    %15 = vector.load %arg7[%c0_13, %c0_14] : memref<1x1024xf32, #tpu.memory_space<vmem>>, vector<1x1024xf32>
    %16 = vector.broadcast %15 : vector<1x1024xf32> to vector<2x1024xf32>
    %17 = arith.addf %14, %16 : vector<2x1024xf32>
    %18 = math.tanh %17 : vector<2x1024xf32>
    %c0_15 = arith.constant 0 : index
    %c0_16 = arith.constant 0 : index
    %19 = vector.load %arg8[%c0_15, %c0_16] : memref<1024x128xf32, #tpu.memory_space<vmem>>, vector<1024x128xf32>
    %cst_17 = arith.constant dense<0.000000e+00> : vector<2x128xf32>
    %20 = tpu.matmul %18, %19, %cst_17 {dimension_numbers = #tpu.dot_dimension_numbers<[1], [0], [0], [1], [0, 0, 1, 1], [], []>} : vector<2x1024xf32>, vector<1024x128xf32>, vector<2x128xf32> -> vector<2x128xf32>
    %c0_18 = arith.constant 0 : index
    %c0_19 = arith.constant 0 : index
    %21 = vector.load %arg9[%c0_18, %c0_19] : memref<1x128xf32, #tpu.memory_space<vmem>>, vector<1x128xf32>
    %22 = vector.broadcast %21 : vector<1x128xf32> to vector<2x128xf32>
    %23 = arith.addf %20, %22 : vector<2x128xf32>
    %c0_20 = arith.constant 0 : index
    %c0_21 = arith.constant 0 : index
    %24 = vector.load %arg10[%c0_20, %c0_21] : memref<2x128xf32, #tpu.memory_space<vmem>>, vector<2x128xf32>
    tpu.vector_store %arg10[%c0_20, %c0_21], %23 {strides = array<i32>} : memref<2x128xf32, #tpu.memory_space<vmem>>, vector<2x128xf32>,
    return
  }
  func.func @transform_0(%arg0: i32) -> (i32, i32) {
    %c0_i32 = arith.constant 0 : i32
    %c0_i32_0 = arith.constant 0 : i32
    return %arg0, %c0_i32 : i32, i32
  }
  func.func @transform_1(%arg0: i32) -> (i32, i32) {
    %c0_i32 = arith.constant 0 : i32
    %c0_i32_0 = arith.constant 0 : i32
    %c0_i32_1 = arith.constant 0 : i32
    return %c0_i32, %c0_i32_0 : i32, i32
  }
  func.func @transform_2(%arg0: i32) -> (i32, i32) {
    %c0_i32 = arith.constant 0 : i32
    %c0_i32_0 = arith.constant 0 : i32
    %c0_i32_1 = arith.constant 0 : i32
    return %c0_i32, %c0_i32_0 : i32, i32
  }
  func.func @transform_3(%arg0: i32) -> (i32, i32) {
    %c0_i32 = arith.constant 0 : i32
    %c0_i32_0 = arith.constant 0 : i32
    %c0_i32_1 = arith.constant 0 : i32
    return %c0_i32, %c0_i32_0 : i32, i32
  }
  func.func @transform_4(%arg0: i32) -> (i32, i32) {
    %c0_i32 = arith.constant 0 : i32
    %c0_i32_0 = arith.constant 0 : i32
    %c0_i32_1 = arith.constant 0 : i32
    return %c0_i32, %c0_i32_0 : i32, i32
  }
  func.func @transform_5(%arg0: i32) -> (i32, i32) {
    %c0_i32 = arith.constant 0 : i32
    %c0_i32_0 = arith.constant 0 : i32
    %c0_i32_1 = arith.constant 0 : i32
    return %c0_i32, %c0_i32_0 : i32, i32
  }
  func.func @transform_6(%arg0: i32) -> (i32, i32) {
    %c0_i32 = arith.constant 0 : i32
    %c0_i32_0 = arith.constant 0 : i32
    %c0_i32_1 = arith.constant 0 : i32
    return %c0_i32, %c0_i32_0 : i32, i32
  }
  func.func @transform_7(%arg0: i32) -> (i32, i32) {
    %c0_i32 = arith.constant 0 : i32
    %c0_i32_0 = arith.constant 0 : i32
    %c0_i32_1 = arith.constant 0 : i32
    return %c0_i32, %c0_i32_0 : i32, i32
  }
  func.func @transform_8(%arg0: i32) -> (i32, i32) {
    %c0_i32 = arith.constant 0 : i32
    %c0_i32_0 = arith.constant 0 : i32
    %c0_i32_1 = arith.constant 0 : i32
    return %c0_i32, %c0_i32_0 : i32, i32
  }
  func.func @transform_9(%arg0: i32) -> (i32, i32) {
    %c0_i32 = arith.constant 0 : i32
    %c0_i32_0 = arith.constant 0 : i32
    return %arg0, %c0_i32 : i32, i32
  }
}

</mosaic_0001>

<bundles_post_ra>
// kernel: cnn2ch_2cv_forward.1
= control target key start
LH: loop header
LB: loop body
LE: loop exit
PB: predicated region body
PF: predicated region fallthrough
CT: control target
= control target key end

     0   :  { %14 = vsyncpa [#allocation3], 0  ;;  %s2640_s0 = inlined_call_operand.vmem [shape: f32[2,64], index: 0, kind: input, shape index: {}]   ;;  %s2641_s1 = inlined_call_operand.hbm [shape: f32[64,480], index: 1, kind: input, shape index: {}]   ;;  %s2642_s2 = inlined_call_operand.vmem [shape: f32[1,480], index: 2, kind: input, shape index: {}]   ;;  %s2643_s3 = inlined_call_operand.hbm [shape: f32[480,256], index: 3, kind: input, shape index: {}]   ;;  %s2644_s4 = inlined_call_operand.vmem [shape: f32[1,256], index: 4, kind: input, shape index: {}]   ;;  %s2645_s5 = inlined_call_operand.hbm [shape: f32[256,1024], index: 5, kind: input, shape index: {}]   ;;  %s2646_s6 = inlined_call_operand.vmem [shape: f32[1,1024], index: 6, kind: input, shape index: {}]   ;;  %s2647_s7 = inlined_call_operand.hbm [shape: f32[1024,128], index: 7, kind: input, shape index: {}]   ;;  %s2648_s8 = inlined_call_operand.vmem [shape: f32[1,128], index: 8, kind: input, shape index: {}]   ;;  %s2649_s9 = inlined_call_operand.hbm [shape: f32[2,128], index: 9, kind: output, shape index: {}]  }
   0x1   :  { %15 = vsyncpa [#allocation6], 0 }
   0x2   :  { %16 = vsyncpa [#allocation9], 0 }
   0x3   :  { %17 = vsyncpa [#allocation4], 0  ;;  %s2440_s30 = smov [#allocation5]   ;;  %s2322_s13 = scalar_lea.hbm %s2643_s3, 15360 }
   0x4   :  { %s39_s10 = sshll.u32 %s2440_s30, 4  ;;  %p2323_p0 = scmp.ne.s32.totalorder %s2643_s3, %s2322_s13  ;;  %s40_s10 = int_to_ptr.vmem [resolvable:$true] %s39_s10 }
   0x5   :  { %p2326_p1 = scmp.lt.u32.totalorder %s2322_s13, %s2643_s3 }
   0x7   :  { %p2328_p2 = pnand %p2326_p1, %p2323_p0 }
   0x9   :  { %2331 = shalt.err (!%p2328_p2)
}
   0xa   :  { %s2332_s18 = scalar_lea.vmem %s40_s10, 15360  ;;  %p2337_p4 = scmp.lt.s32.totalorder %s40_s10, %s40_s10 }
   0xb   :  { %p2333_p3 = scmp.ne.s32.totalorder %s40_s10, %s2332_s18  ;;  %p2338_p5 = scmp.lt.s32.totalorder %s2332_s18, %s2332_s18 }
   0xd   :  { %p2339_p6 = por %p2338_p5, %p2337_p4 }
   0xf   :  { %p2340_p7 = pnand %p2339_p6, %p2333_p3 }
  0x11   :  { %2343 = shalt.err (!%p2340_p7)
}
  0x12   :  { %s2441_s19 = smov 256   ;;  %s2442_s20 = smov 16  }
  0x13   :  { %45 = dma.hbm_to_vmem [thread:$0]  %s2643_s3, 15360, %s40_s10, [#allocation6], %s2441_s19, %s2441_s19, %s2442_s20  }
  0x14   :  { %s2443_s23 = smov [#allocation2]   ;;  %s2344_s27 = scalar_lea.hbm %s2641_s1, 4096 }
  0x15   :  { %s25_s24 = sshll.u32 %s2443_s23, 4  ;;  %p2345_p8 = scmp.ne.s32.totalorder %s2641_s1, %s2344_s27  ;;  %s26_s24 = int_to_ptr.vmem [resolvable:$true] %s25_s24 }
  0x16   :  { %p2348_p9 = scmp.lt.u32.totalorder %s2344_s27, %s2641_s1 }
  0x18   :  { %p2350_p10 = pnand %p2348_p9, %p2345_p8 }
  0x1a   :  { %2353 = shalt.err (!%p2350_p10)
}
  0x1b   :  { %s2354_s12 = scalar_lea.vmem %s26_s24, 4096  ;;  %p2359_p12 = scmp.lt.s32.totalorder %s26_s24, %s26_s24 }
  0x1c   :  { %p2355_p11 = scmp.ne.s32.totalorder %s26_s24, %s2354_s12  ;;  %p2360_p13 = scmp.lt.s32.totalorder %s2354_s12, %s2354_s12 }
  0x1e   :  { %p2361_p0 = por %p2360_p13, %p2359_p12 }
  0x20   :  { %p2362_p1 = pnand %p2361_p0, %p2355_p11 }
  0x22   :  { %2365 = shalt.err (!%p2362_p1)
}
  0x23   :  { %s2444_s3 = smov 512   ;;  %s2445_s10 = smov 32  }
  0x24   :  { %31 = dma.hbm_to_vmem [thread:$0]  %s2641_s1, 4096, %s26_s24, [#allocation3], %s2444_s3, %s2444_s3, %s2445_s10  }
  0x25   :  { %s2446_s15 = smov [#allocation7]   ;;  %s2366_s19 = scalar_lea.hbm %s2645_s5, 32768 }
  0x26   :  { %s53_s16 = sshll.u32 %s2446_s15, 4  ;;  %p2367_p2 = scmp.ne.s32.totalorder %s2645_s5, %s2366_s19  ;;  %s54_s16 = int_to_ptr.vmem [resolvable:$true] %s53_s16 }
  0x27   :  { %p2370_p3 = scmp.lt.u32.totalorder %s2366_s19, %s2645_s5 }
  0x29   :  { %p2372_p4 = pnand %p2370_p3, %p2367_p2 }
  0x2b   :  { %2375 = shalt.err (!%p2372_p4)
}
  0x2c   :  { %s2376_s25 = scalar_lea.vmem %s54_s16, 32768  ;;  %p2381_p6 = scmp.lt.s32.totalorder %s54_s16, %s54_s16 }
  0x2d   :  { %p2377_p5 = scmp.ne.s32.totalorder %s54_s16, %s2376_s25  ;;  %p2382_p7 = scmp.lt.s32.totalorder %s2376_s25, %s2376_s25 }
  0x2f   :  { %p2383_p8 = por %p2382_p7, %p2381_p6 }
  0x31   :  { %p2384_p9 = pnand %p2383_p8, %p2377_p5 }
  0x33   :  { %2387 = shalt.err (!%p2384_p9)
}
  0x34   :  { %s2447_s1 = smov 1024   ;;  %s2448_s24 = smov 64  }
  0x35   :  { %59 = dma.hbm_to_vmem [thread:$0]  %s2645_s5, 32768, %s54_s16, [#allocation6], %s2447_s1, %s2447_s1, %s2448_s24  }
  0x36   :  { %s2449_s28 = smov [#allocation8]   ;;  %s2388_s12 = scalar_lea.hbm %s2647_s7, 16384 }
  0x37   :  { %s67_s29 = sshll.u32 %s2449_s28, 4  ;;  %p2389_p10 = scmp.ne.s32.totalorder %s2647_s7, %s2388_s12  ;;  %s68_s29 = int_to_ptr.vmem [resolvable:$true] %s67_s29 }
  0x38   :  { %p2392_p11 = scmp.lt.u32.totalorder %s2388_s12, %s2647_s7 }
  0x3a   :  { %p2394_p12 = pnand %p2392_p11, %p2389_p10 }
  0x3c   :  { %2397 = shalt.err (!%p2394_p12)
}
  0x3d   :  { %s2398_s15 = scalar_lea.vmem %s68_s29, 16384  ;;  %p2403_p0 = scmp.lt.s32.totalorder %s68_s29, %s68_s29 }
  0x3e   :  { %p2399_p13 = scmp.ne.s32.totalorder %s68_s29, %s2398_s15  ;;  %p2404_p1 = scmp.lt.s32.totalorder %s2398_s15, %s2398_s15 }
  0x40   :  { %p2405_p2 = por %p2404_p1, %p2403_p0 }
  0x42   :  { %p2406_p3 = pnand %p2405_p2, %p2399_p13 }
  0x44   :  { %2409 = shalt.err (!%p2406_p3)
}
  0x45   :  { %s2450_s5 = smov 128   ;;  %s2451_s16 = smov 8  }
  0x46   :  { %73 = dma.hbm_to_vmem [thread:$0]  %s2647_s7, 16384, %s68_s29, [#allocation9], %s2450_s5, %s2450_s5, %s2451_s16  }
  0x47   :  { %2432 = dma.done.wait [#allocation3], 4096  }
  0x48   :  { %2433 = vsyncadd [#allocation3], 4294963200 }
  0x49   :  { %2434 = dma.done.wait [#allocation6], 48128  }
  0x4a   :  { %2435 = vsyncadd [#allocation6], 4294919168 }
  0x4b   :  { %2436 = dma.done.wait [#allocation9], 16384  }
  0x4c   :  { %2437 = vsyncadd [#allocation9], 4294950912  ;;  %v2452_v0 = vmov 0.0   ;;  %v90_v1 = vld [vmem:[#allocation2 + $0x8] sm:$0xff]  ;;  %v89_v3 = vld [vmem:[#allocation2] sm:$0xff]  ;;  %vm143_vm0 = vcmask 523264  }
  0x4d   :  { %211 = vmatprep.mubr.f32.mxu0 %v2452_v0  ;;  %282 = vmatprep.mubr.f32.mxu1 %v2452_v0  ;;  %v94_v2 = vld [vmem:[#allocation2 + $0x28] sm:$0xff]  ;;  %v93_v5 = vld [vmem:[#allocation2 + $0x20] sm:$0xff]  ;;  %v92_v20 = vld [vmem:[#allocation2 + $0x18] sm:$0xff]  ;;  %vm425_vm1 = vcmask 785408   ;;  %s2453_s25 = smov [#allocation10]  }
  0x4e   :  { %v1740_v4 = vpack.c.bf16 %v94_v2, %v90_v1  ;;  %v98_v6 = vld [vmem:[#allocation2 + $0x48] sm:$0xff]  ;;  %v1742_v8 = vpack.c.bf16 %v93_v5, %v89_v3  ;;  %v97_v10 = vld [vmem:[#allocation2 + $0x40] sm:$0xff]  ;;  %v96_v21 = vld [vmem:[#allocation2 + $0x38] sm:$0xff]  ;;  %s1585_s1 = sshll.u32 %s2453_s25, 4  ;;  %s1586_s1 = int_to_ptr.vmem [resolvable:$true] %s1585_s1 }
  0x4f   :  { %v102_v7 = vld [vmem:[#allocation2 + $0x68] sm:$0xff]  ;;  %v101_v11 = vld [vmem:[#allocation2 + $0x60] sm:$0xff]  ;;  %v91_v22 = vld [vmem:[#allocation2 + $0x10] sm:$0xff]  ;;  %v1756_v24 = vpack.c.bf16 %v96_v21, %v92_v20  ;;  %s2410_s24 = scalar_lea.vmem %s1586_s1, 32  ;;  %p2415_p5 = scmp.lt.s32.totalorder %s1586_s1, %s1586_s1 }
  0x50   :  { %v1744_v9 = vpack.c.bf16 %v102_v7, %v98_v6  ;;  %v106_v12 = vld [vmem:[#allocation2 + $0x88] sm:$0xff]  ;;  %1741 = vmatprep.subr.bf16.mxu0 %v1740_v4  ;;  %v1746_v14 = vpack.c.bf16 %v101_v11, %v97_v10  ;;  %v105_v15 = vld [vmem:[#allocation2 + $0x80] sm:$0xff]  ;;  %v95_v23 = vld [vmem:[#allocation2 + $0x30] sm:$0xff]  ;;  %p2411_p4 = scmp.ne.s32.totalorder %s1586_s1, %s2410_s24  ;;  %p2416_p6 = scmp.lt.s32.totalorder %s2410_s24, %s2410_s24 }
  0x51   :  { %v110_v13 = vld [vmem:[#allocation2 + $0xa8] sm:$0xff]  ;;  %1743 = vmatpush1.bf16.msra.mxu0 %v1742_v8  ;;  %v109_v16 = vld [vmem:[#allocation2 + $0xa0] sm:$0xff]  ;;  %v1758_v25 = vpack.c.bf16 %v95_v23, %v91_v22  ;;  %v100_v26 = vld [vmem:[#allocation2 + $0x58] sm:$0xff]  ;;  %1757 = vmatprep.subr.bf16.mxu1 %v1756_v24 }
  0x52   :  { %1745 = vmatprep.subr.bf16.mxu0 %v1744_v9  ;;  %v1748_v17 = vpack.c.bf16 %v110_v13, %v106_v12  ;;  %v114_v18 = vld [vmem:[#allocation2 + $0xc8] sm:$0xff]  ;;  %v104_v27 = vld [vmem:[#allocation2 + $0x78] sm:$0xff]  ;;  %v99_v28 = vld [vmem:[#allocation2 + $0x50] sm:$0xff]  ;;  %v1750_v29 = vpack.c.bf16 %v109_v16, %v105_v15  ;;  %p2417_p7 = por %p2416_p6, %p2415_p5 }
  0x53   :  { %v118_v19 = vld [vmem:[#allocation2 + $0xe8] sm:$0xff]  ;;  %v1760_v30 = vpack.c.bf16 %v104_v27, %v100_v26  ;;  %v103_v31 = vld [vmem:[#allocation2 + $0x70] sm:$0xff]  ;;  %v108_v32 = vld [vmem:[#allocation2 + $0x98] sm:$0xff]  ;;  %1759 = vmatpush1.bf16.msra.mxu1 %v1758_v25 }
  0x54   :  { %v112_v33 = vld [vmem:[#allocation2 + $0xb8] sm:$0xff]  ;;  %v1752_v34 = vpack.c.bf16 %v118_v19, %v114_v18  ;;  %v113_v35 = vld [vmem:[#allocation2 + $0xc0] sm:$0xff]  ;;  %v1762_v37 = vpack.c.bf16 %v103_v31, %v99_v28  ;;  %v107_v38 = vld [vmem:[#allocation2 + $0x90] sm:$0xff]  ;;  %p2418_p8 = pnand %p2417_p7, %p2411_p4 }
  0x55   :  { %1747 = vmatpush1.bf16.msra.mxu0 %v1746_v14  ;;  %v117_v36 = vld [vmem:[#allocation2 + $0xe0] sm:$0xff]  ;;  %1761 = vmatprep.subr.bf16.mxu1 %v1760_v30  ;;  %v1764_v39 = vpack.c.bf16 %v112_v33, %v108_v32  ;;  %v111_v40 = vld [vmem:[#allocation2 + $0xb0] sm:$0xff]  ;;  %v294_v41 = vld [vmem:[#allocation5 + $0x8] sm:$0xff] }
  0x56   :  { %1749 = vmatprep.subr.bf16.mxu0 %v1748_v17  ;;  %v296_v42 = vld [vmem:[#allocation5 + $0x18] sm:$0xff]  ;;  %v1754_v43 = vpack.c.bf16 %v117_v36, %v113_v35  ;;  %v293_v47 = vld [vmem:[#allocation5] sm:$0xff]  ;;  %v295_v48 = vld [vmem:[#allocation5 + $0x10] sm:$0xff]  ;;  %v1766_v49 = vpack.c.bf16 %v111_v40, %v107_v38 }
  0x57   :  { %v116_v44 = vld [vmem:[#allocation2 + $0xd8] sm:$0xff]  ;;  %v1772_v46 = vpack.c.bf16 %v296_v42, %v294_v41  ;;  %1763 = vmatpush1.bf16.msra.mxu1 %v1762_v37  ;;  %v298_v50 = vld [vmem:[#allocation5 + $0x28] sm:$0xff]  ;;  %v115_v53 = vld [vmem:[#allocation2 + $0xd0] sm:$0xff]  ;;  %v1774_v56 = vpack.c.bf16 %v295_v48, %v293_v47 }
  0x58   :  { %v120_v45 = vld [vmem:[#allocation2 + $0xf8] sm:$0xff]  ;;  %1765 = vmatprep.subr.bf16.mxu1 %v1764_v39  ;;  %v119_v54 = vld [vmem:[#allocation2 + $0xf0] sm:$0xff]  ;;  %v88_v55 = vld [vmem:[%s2640_s0] sm:$0x3] }
  0x59   :  { %1751 = vmatpush1.bf16.msra.mxu0 %v1750_v29  ;;  %v300_v51 = vld [vmem:[#allocation5 + $0x38] sm:$0xff]  ;;  %v1768_v52 = vpack.c.bf16 %v120_v45, %v116_v44  ;;  %v297_v58 = vld [vmem:[#allocation5 + $0x20] sm:$0xff]  ;;  %v299_v59 = vld [vmem:[#allocation5 + $0x30] sm:$0xff]  ;;  %v1770_v60 = vpack.c.bf16 %v119_v54, %v115_v53 }
  0x5a   :  { %1753 = vmatprep.subr.bf16.mxu0 %v1752_v34  ;;  %v1776_v57 = vpack.c.bf16 %v300_v51, %v298_v50  ;;  %v302_v61 = vld [vmem:[#allocation5 + $0x48] sm:$0xff]  ;;  %v304_v62 = vld [vmem:[#allocation5 + $0x58] sm:$0xff]  ;;  %v1778_v63 = vpack.c.bf16 %v299_v59, %v297_v58  ;;  %v301_v1 = vld [vmem:[#allocation5 + $0x40] sm:$0xff] }
  0x5b   :  { %1767 = vmatpush1.bf16.msra.mxu1 %v1766_v49  ;;  %v1780_v0 = vpack.c.bf16 %v304_v62, %v302_v61  ;;  %v303_v2 = vld [vmem:[#allocation5 + $0x50] sm:$0xff]  ;;  %v306_v3 = vld [vmem:[#allocation5 + $0x68] sm:$0xff]  ;;  %v308_v4 = vld [vmem:[#allocation5 + $0x78] sm:$0xff] }
  0x5c   :  { %1769 = vmatprep.subr.bf16.mxu1 %v1768_v52  ;;  %v1782_v5 = vpack.c.bf16 %v303_v2, %v301_v1  ;;  %v1784_v6 = vpack.c.bf16 %v308_v4, %v306_v3  ;;  %v305_v7 = vld [vmem:[#allocation5 + $0x60] sm:$0xff]  ;;  %v307_v8 = vld [vmem:[#allocation5 + $0x70] sm:$0xff]  ;;  %v310_v9 = vld [vmem:[#allocation5 + $0x88] sm:$0xff] }
  0x5d   :  { %1755 = vmatpush1.bf16.msra.mxu0 %v1754_v43  ;;  %v312_v10 = vld [vmem:[#allocation5 + $0x98] sm:$0xff]  ;;  %v1786_v11 = vpack.c.bf16 %v307_v8, %v305_v7  ;;  %v309_v13 = vld [vmem:[#allocation5 + $0x80] sm:$0xff]  ;;  %v311_v14 = vld [vmem:[#allocation5 + $0x90] sm:$0xff] }
  0x5e   :  { %1773 = vmatprep.subr.bf16.mxu0 %v1772_v46  ;;  %v1788_v12 = vpack.c.bf16 %v312_v10, %v310_v9  ;;  %v314_v15 = vld [vmem:[#allocation5 + $0xa8] sm:$0xff]  ;;  %v316_v16 = vld [vmem:[#allocation5 + $0xb8] sm:$0xff]  ;;  %v1790_v17 = vpack.c.bf16 %v311_v14, %v309_v13  ;;  %v313_v19 = vld [vmem:[#allocation5 + $0xa0] sm:$0xff] }
  0x5f   :  { %1771 = vmatpush1.bf16.msra.mxu1 %v1770_v60  ;;  %v1792_v18 = vpack.c.bf16 %v316_v16, %v314_v15  ;;  %v315_v20 = vld [vmem:[#allocation5 + $0xb0] sm:$0xff]  ;;  %v318_v21 = vld [vmem:[#allocation5 + $0xc8] sm:$0xff]  ;;  %v320_v22 = vld [vmem:[#allocation5 + $0xd8] sm:$0xff] }
  0x60   :  { %1596 = vmatmul.mubr.msk.f32.vlgmr.msra.gmra.mrb[0].mxu0 %vm143_vm0, %v88_v55  ;;  %v1794_v23 = vpack.c.bf16 %v315_v20, %v313_v19  ;;  %v1796_v24 = vpack.c.bf16 %v320_v22, %v318_v21  ;;  %v317_v25 = vld [vmem:[#allocation5 + $0xc0] sm:$0xff]  ;;  %v319_v26 = vld [vmem:[#allocation5 + $0xd0] sm:$0xff]  ;;  %v322_v27 = vld [vmem:[#allocation5 + $0xe8] sm:$0xff] }
  0x61   :  { %1775 = vmatpush1.bf16.msra.mxu0 %v1774_v56  ;;  %v324_v28 = vld [vmem:[#allocation5 + $0xf8] sm:$0xff]  ;;  %v1798_v29 = vpack.c.bf16 %v319_v26, %v317_v25  ;;  %v321_v31 = vld [vmem:[#allocation5 + $0xe0] sm:$0xff]  ;;  %v323_v32 = vld [vmem:[#allocation5 + $0xf0] sm:$0xff] }
  0x62   :  { %1777 = vmatprep.subr.bf16.mxu0 %v1776_v57  ;;  %1597 = vmatmul.mubr.msk.f32.vlgmr.msra.gmra.mrb[0].mxu1 %vm143_vm0, %v88_v55  ;;  %v1800_v30 = vpack.c.bf16 %v324_v28, %v322_v27  ;;  %v326_v33 = vld [vmem:[#allocation5 + $0x108] sm:$0xff]  ;;  %v328_v34 = vld [vmem:[#allocation5 + $0x118] sm:$0xff]  ;;  %v1802_v35 = vpack.c.bf16 %v323_v32, %v321_v31  ;;  %v325_v37 = vld [vmem:[#allocation5 + $0x100] sm:$0xff] }
  0x63   :  { %v1804_v36 = vpack.c.bf16 %v328_v34, %v326_v33  ;;  %v327_v38 = vld [vmem:[#allocation5 + $0x110] sm:$0xff]  ;;  %v330_v39 = vld [vmem:[#allocation5 + $0x128] sm:$0xff]  ;;  %v332_v40 = vld [vmem:[#allocation5 + $0x138] sm:$0xff] }
  0x64   :  { %v1806_v41 = vpack.c.bf16 %v327_v38, %v325_v37  ;;  %v1808_v42 = vpack.c.bf16 %v332_v40, %v330_v39  ;;  %v329_v43 = vld [vmem:[#allocation5 + $0x120] sm:$0xff]  ;;  %v331_v44 = vld [vmem:[#allocation5 + $0x130] sm:$0xff]  ;;  %v334_v45 = vld [vmem:[#allocation5 + $0x148] sm:$0xff] }
  0x65   :  { %1779 = vmatpush1.bf16.msra.mxu0 %v1778_v63  ;;  %v336_v46 = vld [vmem:[#allocation5 + $0x158] sm:$0xff]  ;;  %v1810_v47 = vpack.c.bf16 %v331_v44, %v329_v43  ;;  %v333_v49 = vld [vmem:[#allocation5 + $0x140] sm:$0xff]  ;;  %v335_v50 = vld [vmem:[#allocation5 + $0x150] sm:$0xff] }
  0x66   :  { %1781 = vmatprep.subr.bf16.mxu0 %v1780_v0  ;;  %v1812_v48 = vpack.c.bf16 %v336_v46, %v334_v45  ;;  %v338_v51 = vld [vmem:[#allocation5 + $0x168] sm:$0xff]  ;;  %v340_v52 = vld [vmem:[#allocation5 + $0x178] sm:$0xff]  ;;  %v1814_v53 = vpack.c.bf16 %v335_v50, %v333_v49  ;;  %v337_v55 = vld [vmem:[#allocation5 + $0x160] sm:$0xff] }
  0x67   :  { %v1816_v54 = vpack.c.bf16 %v340_v52, %v338_v51  ;;  %v339_v56 = vld [vmem:[#allocation5 + $0x170] sm:$0xff]  ;;  %v342_v57 = vld [vmem:[#allocation5 + $0x188] sm:$0xff]  ;;  %v344_v58 = vld [vmem:[#allocation5 + $0x198] sm:$0xff] }
  0x68   :  { %v1818_v59 = vpack.c.bf16 %v339_v56, %v337_v55  ;;  %v1820_v60 = vpack.c.bf16 %v344_v58, %v342_v57  ;;  %v341_v61 = vld [vmem:[#allocation5 + $0x180] sm:$0xff]  ;;  %v343_v62 = vld [vmem:[#allocation5 + $0x190] sm:$0xff]  ;;  %v346_v0 = vld [vmem:[#allocation5 + $0x1a8] sm:$0xff] }
  0x69   :  { %1783 = vmatpush1.bf16.msra.mxu0 %v1782_v5  ;;  %v1822_v63 = vpack.c.bf16 %v343_v62, %v341_v61  ;;  %v348_v1 = vld [vmem:[#allocation5 + $0x1b8] sm:$0xff]  ;;  %v345_v3 = vld [vmem:[#allocation5 + $0x1a0] sm:$0xff]  ;;  %v347_v4 = vld [vmem:[#allocation5 + $0x1b0] sm:$0xff] }
  0x6a   :  { %1785 = vmatprep.subr.bf16.mxu0 %v1784_v6  ;;  %v1824_v2 = vpack.c.bf16 %v348_v1, %v346_v0  ;;  %v1826_v5 = vpack.c.bf16 %v347_v4, %v345_v3  ;;  %v350_v6 = vld [vmem:[#allocation5 + $0x1c8] sm:$0xff]  ;;  %v352_v7 = vld [vmem:[#allocation5 + $0x1d8] sm:$0xff]  ;;  %v349_v8 = vld [vmem:[#allocation5 + $0x1c0] sm:$0xff] }
  0x6b   :  { %v1828_v9 = vpack.c.bf16 %v352_v7, %v350_v6  ;;  %v351_v10 = vld [vmem:[#allocation5 + $0x1d0] sm:$0xff]  ;;  %v353_v15 = vld [vmem:[#allocation5 + $0x1e0] sm:$0xff]  ;;  %v360_v19 = vld [vmem:[#allocation5 + $0x218] sm:$0xff] }
  0x6c   :  { %v1830_v13 = vpack.c.bf16 %v351_v10, %v349_v8  ;;  %v355_v16 = vld [vmem:[#allocation5 + $0x1f0] sm:$0xff]  ;;  %v574_v21 = vld [vmem:[#allocation7 + $0x8] sm:$0xff]  ;;  %v581_v25 = vld [vmem:[#allocation7 + $0x40] sm:$0xff] }
  0x6d   :  { %1787 = vmatpush1.bf16.msra.mxu0 %v1786_v11  ;;  %v354_v11 = vld [vmem:[#allocation5 + $0x1e8] sm:$0xff]  ;;  %v613_v37 = vld [vmem:[#allocation7 + $0x140] sm:$0xff] }
  0x6e   :  { %1789 = vmatprep.subr.bf16.mxu0 %v1788_v12  ;;  %v356_v12 = vld [vmem:[#allocation5 + $0x1f8] sm:$0xff]  ;;  %v582_v22 = vld [vmem:[#allocation7 + $0x48] sm:$0xff]  ;;  %v629_v43 = vld [vmem:[#allocation7 + $0x1c0] sm:$0xff] }
  0x6f   :  { %v1832_v14 = vpack.c.bf16 %v356_v12, %v354_v11  ;;  %v590_v27 = vld [vmem:[#allocation7 + $0x88] sm:$0xff]  ;;  %v645_v49 = vld [vmem:[#allocation7 + $0x240] sm:$0xff] }
  0x70   :  { %v598_v28 = vld [vmem:[#allocation7 + $0xc8] sm:$0xff]  ;;  %v661_v55 = vld [vmem:[#allocation7 + $0x2c0] sm:$0xff] }
  0x71   :  { %1791 = vmatpush1.bf16.msra.mxu0 %v1790_v17  ;;  %v1834_v17 = vpack.c.bf16 %v355_v16, %v353_v15  ;;  %v1896_v31 = vpack.c.bf16 %v598_v28, %v590_v27  ;;  %v606_v33 = vld [vmem:[#allocation7 + $0x108] sm:$0xff]  ;;  %v677_v61 = vld [vmem:[#allocation7 + $0x340] sm:$0xff] }
  0x72   :  { %1793 = vmatprep.subr.bf16.mxu0 %v1792_v18  ;;  %v358_v18 = vld [vmem:[#allocation5 + $0x208] sm:$0xff]  ;;  %v685_v1 = vld [vmem:[#allocation7 + $0x380] sm:$0xff] }
  0x73   :  { %v1836_v20 = vpack.c.bf16 %v360_v19, %v358_v18  ;;  %v614_v34 = vld [vmem:[#allocation7 + $0x148] sm:$0xff]  ;;  %v693_v3 = vld [vmem:[#allocation7 + $0x3c0] sm:$0xff] }
  0x74   :  { %v622_v39 = vld [vmem:[#allocation7 + $0x188] sm:$0xff]  ;;  %v1922_v4 = vpack.c.bf16 %v693_v3, %v685_v1  ;;  %v701_v7 = vld [vmem:[#allocation7 + $0x400] sm:$0xff]  ;;  %v372_v1 = vld [vmem:[#allocation5 + $0x278] sm:$0xff] }
  0x75   :  { %1795 = vmatpush1.bf16.msra.mxu0 %v1794_v23  ;;  %v573_v23 = vld [vmem:[#allocation7] sm:$0xff]  ;;  %v630_v40 = vld [vmem:[#allocation7 + $0x1c8] sm:$0xff] }
  0x76   :  { %1797 = vmatprep.subr.bf16.mxu0 %v1796_v24  ;;  %v1892_v24 = vpack.c.bf16 %v582_v22, %v574_v21  ;;  %v1894_v26 = vpack.c.bf16 %v581_v25, %v573_v23  ;;  %v638_v45 = vld [vmem:[#allocation7 + $0x208] sm:$0xff]  ;;  %v725_v15 = vld [vmem:[#allocation7 + $0x4c0] sm:$0xff]  ;;  %v123_v23 = vlaneseq }
  0x77   :  { %v646_v46 = vld [vmem:[#allocation7 + $0x248] sm:$0xff]  ;;  %v733_v19 = vld [vmem:[#allocation7 + $0x500] sm:$0xff] }
  0x78   :  { %1893 = vmatprep.subr.bf16.mxu1 %v1892_v24  ;;  %v654_v51 = vld [vmem:[#allocation7 + $0x288] sm:$0xff]  ;;  %v741_v21 = vld [vmem:[#allocation7 + $0x540] sm:$0xff] }
  0x79   :  { %1799 = vmatpush1.bf16.msra.mxu0 %v1798_v29  ;;  %v589_v29 = vld [vmem:[#allocation7 + $0x80] sm:$0xff]  ;;  %1895 = vmatpush1.bf16.msra.mxu1 %v1894_v26  ;;  %v662_v52 = vld [vmem:[#allocation7 + $0x2c8] sm:$0xff]  ;;  %v1934_v22 = vpack.c.bf16 %v741_v21, %v733_v19 }
  0x7a   :  { %1801 = vmatprep.subr.bf16.mxu0 %v1800_v30  ;;  %v597_v30 = vld [vmem:[#allocation7 + $0xc0] sm:$0xff]  ;;  %1897 = vmatprep.subr.bf16.mxu1 %v1896_v31  ;;  %v670_v57 = vld [vmem:[#allocation7 + $0x308] sm:$0xff] }
  0x7b   :  { %v1898_v32 = vpack.c.bf16 %v597_v30, %v589_v29  ;;  %v678_v58 = vld [vmem:[#allocation7 + $0x348] sm:$0xff]  ;;  %v749_v26 = vld [vmem:[#allocation7 + $0x580] sm:$0xff]  ;;  %v2557_v30 = vshrl.u32 %v123_v23, 7 }
  0x7c   :  { %v694_v0 = vld [vmem:[#allocation7 + $0x3c8] sm:$0xff]  ;;  %v757_v28 = vld [vmem:[#allocation7 + $0x5c0] sm:$0xff] }
  0x7d   :  { %1803 = vmatpush1.bf16.msra.mxu0 %v1802_v35  ;;  %v1900_v35 = vpack.c.bf16 %v614_v34, %v606_v33  ;;  %1899 = vmatpush1.bf16.msra.mxu1 %v1898_v32  ;;  %v710_v6 = vld [vmem:[#allocation7 + $0x448] sm:$0xff]  ;;  %v1938_v29 = vpack.c.bf16 %v757_v28, %v749_v26  ;;  %v2560_v34 = vsub.s32 0, %v2557_v30  ;;  %v381_v23 = vld [vmem:[#allocation5 + $0x2c0] sm:$0xff]  ;;  %v388_v26 = vld [vmem:[#allocation5 + $0x2f8] sm:$0xff] }
  0x7e   :  { %1805 = vmatprep.subr.bf16.mxu0 %v1804_v36  ;;  %v605_v36 = vld [vmem:[#allocation7 + $0x100] sm:$0xff]  ;;  %v718_v11 = vld [vmem:[#allocation7 + $0x488] sm:$0xff] }
  0x7f   :  { %v1902_v38 = vpack.c.bf16 %v613_v37, %v605_v36  ;;  %1901 = vmatprep.subr.bf16.mxu1 %v1900_v35  ;;  %v726_v12 = vld [vmem:[#allocation7 + $0x4c8] sm:$0xff]  ;;  %v2565_v35 = vld [vmem:[%s2642_s2] sm:$0xf]  ;;  %v2568_v36 = vsub.s32 1, %v2557_v30 }
  0x80   :  { %v742_v18 = vld [vmem:[#allocation7 + $0x548] sm:$0xff]  ;;  %v126_v37 = vrot.slane %v2565_v35, %v2560_v34 }
  0x81   :  { %1807 = vmatpush1.bf16.msra.mxu0 %v1806_v41  ;;  %v621_v41 = vld [vmem:[#allocation7 + $0x180] sm:$0xff]  ;;  %1903 = vmatpush1.bf16.msra.mxu1 %v1902_v38  ;;  %v750_v24 = vld [vmem:[#allocation7 + $0x588] sm:$0xff]  ;;  %v130_v38 = vrot.slane %v2565_v35, %v2568_v36 }
  0x82   :  { %1809 = vmatprep.subr.bf16.mxu0 %v1808_v42  ;;  %v1904_v42 = vpack.c.bf16 %v630_v40, %v622_v39  ;;  %v1906_v44 = vpack.c.bf16 %v629_v43, %v621_v41  ;;  %v758_v25 = vld [vmem:[#allocation7 + $0x5c8] sm:$0xff]  ;;  %v137_v40 = vsub.s32 3, %v2557_v30 }
  0x83   :  { %v1936_v27 = vpack.c.bf16 %v758_v25, %v750_v24  ;;  %v766_v31 = vld [vmem:[#allocation7 + $0x608] sm:$0xff]  ;;  %v383_v24 = vld [vmem:[#allocation5 + $0x2d0] sm:$0xff] }
  0x84   :  { %1905 = vmatprep.subr.bf16.mxu1 %v1904_v42  ;;  %v774_v32 = vld [vmem:[#allocation7 + $0x648] sm:$0xff] }
  0x85   :  { %1811 = vmatpush1.bf16.msra.mxu0 %v1810_v47  ;;  %v637_v47 = vld [vmem:[#allocation7 + $0x200] sm:$0xff]  ;;  %1907 = vmatpush1.bf16.msra.mxu1 %v1906_v44  ;;  %v1940_v33 = vpack.c.bf16 %v774_v32, %v766_v31  ;;  %v138_v44 = vrot.slane %v2565_v35, %v137_v40  ;;  %v382_v19 = vld [vmem:[#allocation5 + $0x2c8] sm:$0xff]  ;;  %v387_v31 = vld [vmem:[#allocation5 + $0x2f0] sm:$0xff] }
  0x86   :  { %1813 = vmatprep.subr.bf16.mxu0 %v1812_v48  ;;  %v1908_v48 = vpack.c.bf16 %v646_v46, %v638_v45  ;;  %v1910_v50 = vpack.c.bf16 %v645_v49, %v637_v47  ;;  %v359_v49 = vld [vmem:[#allocation5 + $0x210] sm:$0xff]  ;;  %v386_v25 = vld [vmem:[#allocation5 + $0x2e8] sm:$0xff] }
  0x87   :  { %v1864_v28 = vpack.c.bf16 %v388_v26, %v386_v25  ;;  %v390_v32 = vld [vmem:[#allocation5 + $0x308] sm:$0xff] }
  0x88   :  { %1909 = vmatprep.subr.bf16.mxu1 %v1908_v48  ;;  %v357_v48 = vld [vmem:[#allocation5 + $0x200] sm:$0xff] }
  0x89   :  { %1815 = vmatpush1.bf16.msra.mxu0 %v1814_v53  ;;  %v653_v53 = vld [vmem:[#allocation7 + $0x280] sm:$0xff]  ;;  %1911 = vmatpush1.bf16.msra.mxu1 %v1910_v50  ;;  %v362_v50 = vld [vmem:[#allocation5 + $0x228] sm:$0xff] }
  0x8a   :  { %1817 = vmatprep.subr.bf16.mxu0 %v1816_v54  ;;  %v1912_v54 = vpack.c.bf16 %v662_v52, %v654_v51  ;;  %v1914_v56 = vpack.c.bf16 %v661_v55, %v653_v53  ;;  %v364_v51 = vld [vmem:[#allocation5 + $0x238] sm:$0xff]  ;;  %v1838_v52 = vpack.c.bf16 %v359_v49, %v357_v48  ;;  %v361_v55 = vld [vmem:[#allocation5 + $0x220] sm:$0xff]  ;;  %v395_v48 = vld [vmem:[#allocation5 + $0x330] sm:$0xff] }
  0x8b   :  { %v398_v49 = vld [vmem:[#allocation5 + $0x348] sm:$0xff] }
  0x8c   :  { %1913 = vmatprep.subr.bf16.mxu1 %v1912_v54  ;;  %v1840_v54 = vpack.c.bf16 %v364_v51, %v362_v50  ;;  %v400_v50 = vld [vmem:[#allocation5 + $0x358] sm:$0xff] }
  0x8d   :  { %1819 = vmatpush1.bf16.msra.mxu0 %v1818_v59  ;;  %v669_v59 = vld [vmem:[#allocation7 + $0x300] sm:$0xff]  ;;  %1915 = vmatpush1.bf16.msra.mxu1 %v1914_v56  ;;  %v363_v56 = vld [vmem:[#allocation5 + $0x230] sm:$0xff] }
  0x8e   :  { %1821 = vmatprep.subr.bf16.mxu0 %v1820_v60  ;;  %v1916_v60 = vpack.c.bf16 %v678_v58, %v670_v57  ;;  %v1918_v62 = vpack.c.bf16 %v677_v61, %v669_v59  ;;  %v366_v58 = vld [vmem:[#allocation5 + $0x248] sm:$0xff]  ;;  %v368_v59 = vld [vmem:[#allocation5 + $0x258] sm:$0xff] }
  0x8f   :  { %v1844_v61 = vpack.c.bf16 %v368_v59, %v366_v58 }
  0x90   :  { %1917 = vmatprep.subr.bf16.mxu1 %v1916_v60  ;;  %v1842_v60 = vpack.c.bf16 %v363_v56, %v361_v55  ;;  %v399_v55 = vld [vmem:[#allocation5 + $0x350] sm:$0xff]  ;;  %v402_v56 = vld [vmem:[#allocation5 + $0x368] sm:$0xff] }
  0x91   :  { %1823 = vmatpush1.bf16.msra.mxu0 %v1822_v63  ;;  %v686_v63 = vld [vmem:[#allocation7 + $0x388] sm:$0xff]  ;;  %1919 = vmatpush1.bf16.msra.mxu1 %v1918_v62  ;;  %v365_v62 = vld [vmem:[#allocation5 + $0x240] sm:$0xff] }
  0x92   :  { %1825 = vmatprep.subr.bf16.mxu0 %v1824_v2  ;;  %v1920_v2 = vpack.c.bf16 %v694_v0, %v686_v63  ;;  %v367_v63 = vld [vmem:[#allocation5 + $0x250] sm:$0xff]  ;;  %v370_v0 = vld [vmem:[#allocation5 + $0x268] sm:$0xff] }
  0x93   :  { %v1846_v3 = vpack.c.bf16 %v367_v63, %v365_v62  ;;  %v403_v62 = vld [vmem:[#allocation5 + $0x370] sm:$0xff]  ;;  %v406_v63 = vld [vmem:[#allocation5 + $0x388] sm:$0xff] }
  0x94   :  { %1921 = vmatprep.subr.bf16.mxu1 %v1920_v2 }
  0x95   :  { %1827 = vmatpush1.bf16.msra.mxu0 %v1826_v5  ;;  %v702_v5 = vld [vmem:[#allocation7 + $0x408] sm:$0xff]  ;;  %1923 = vmatpush1.bf16.msra.mxu1 %v1922_v4  ;;  %v1848_v4 = vpack.c.bf16 %v372_v1, %v370_v0  ;;  %v408_v0 = vld [vmem:[#allocation5 + $0x398] sm:$0xff] }
  0x96   :  { %1829 = vmatprep.subr.bf16.mxu0 %v1828_v9  ;;  %v1924_v8 = vpack.c.bf16 %v710_v6, %v702_v5  ;;  %v709_v9 = vld [vmem:[#allocation7 + $0x440] sm:$0xff]  ;;  %v371_v6 = vld [vmem:[#allocation5 + $0x270] sm:$0xff] }
  0x97   :  { %v1926_v10 = vpack.c.bf16 %v709_v9, %v701_v7  ;;  %v369_v5 = vld [vmem:[#allocation5 + $0x260] sm:$0xff]  ;;  %v374_v7 = vld [vmem:[#allocation5 + $0x288] sm:$0xff] }
  0x98   :  { %1925 = vmatprep.subr.bf16.mxu1 %v1924_v8  ;;  %v376_v8 = vld [vmem:[#allocation5 + $0x298] sm:$0xff]  ;;  %v1850_v9 = vpack.c.bf16 %v371_v6, %v369_v5  ;;  %v407_v5 = vld [vmem:[#allocation5 + $0x390] sm:$0xff]  ;;  %v410_v6 = vld [vmem:[#allocation5 + $0x3a8] sm:$0xff] }
  0x99   :  { %1831 = vmatpush1.bf16.msra.mxu0 %v1830_v13  ;;  %v717_v13 = vld [vmem:[#allocation7 + $0x480] sm:$0xff]  ;;  %1927 = vmatpush1.bf16.msra.mxu1 %v1926_v10  ;;  %v1852_v10 = vpack.c.bf16 %v376_v8, %v374_v7  ;;  %v412_v7 = vld [vmem:[#allocation5 + $0x3b8] sm:$0xff] }
  0x9a   :  { %1833 = vmatprep.subr.bf16.mxu0 %v1832_v14  ;;  %v1928_v14 = vpack.c.bf16 %v726_v12, %v718_v11  ;;  %v1930_v16 = vpack.c.bf16 %v725_v15, %v717_v13  ;;  %v373_v11 = vld [vmem:[#allocation5 + $0x280] sm:$0xff]  ;;  %v375_v12 = vld [vmem:[#allocation5 + $0x290] sm:$0xff]  ;;  %v378_v13 = vld [vmem:[#allocation5 + $0x2a8] sm:$0xff]  ;;  %v1888_v8 = vpack.c.bf16 %v412_v7, %v410_v6 }
  0x9b   :  { %v1854_v15 = vpack.c.bf16 %v375_v12, %v373_v11  ;;  %v578_v11 = vld [vmem:[#allocation7 + $0x28] sm:$0xff]  ;;  %v705_v6 = vld [vmem:[#allocation7 + $0x420] sm:$0xff] }
  0x9c   :  { %1929 = vmatprep.subr.bf16.mxu1 %v1928_v14  ;;  %v380_v14 = vld [vmem:[#allocation5 + $0x2b8] sm:$0xff]  ;;  %v586_v12 = vld [vmem:[#allocation7 + $0x68] sm:$0xff]  ;;  %v713_v7 = vld [vmem:[#allocation7 + $0x460] sm:$0xff] }
  0x9d   :  { %1835 = vmatpush1.bf16.msra.mxu0 %v1834_v17  ;;  %v734_v17 = vld [vmem:[#allocation7 + $0x508] sm:$0xff]  ;;  %1931 = vmatpush1.bf16.msra.mxu1 %v1930_v16  ;;  %v1856_v16 = vpack.c.bf16 %v380_v14, %v378_v13  ;;  %v577_v14 = vld [vmem:[#allocation7 + $0x20] sm:$0xff] }
  0x9e   :  { %1837 = vmatprep.subr.bf16.mxu0 %v1836_v20  ;;  %v1932_v20 = vpack.c.bf16 %v742_v18, %v734_v17  ;;  %v377_v17 = vld [vmem:[#allocation5 + $0x2a0] sm:$0xff]  ;;  %v379_v18 = vld [vmem:[#allocation5 + $0x2b0] sm:$0xff] }
  0x9f   :  { %v1858_v21 = vpack.c.bf16 %v379_v18, %v377_v17  ;;  %v602_v17 = vld [vmem:[#allocation7 + $0xe8] sm:$0xff] }
  0xa0   :  { %1933 = vmatprep.subr.bf16.mxu1 %v1932_v20  ;;  %v384_v20 = vld [vmem:[#allocation5 + $0x2d8] sm:$0xff] }
  0xa1   :  { %1935 = vmatpush1.bf16.msra.mxu1 %v1934_v22  ;;  %v1860_v22 = vpack.c.bf16 %v384_v20, %v382_v19  ;;  %v593_v20 = vld [vmem:[#allocation7 + $0xa0] sm:$0xff] }
  0xa2   :  { %1937 = vmatprep.subr.bf16.mxu1 %v1936_v27  ;;  %v1862_v27 = vpack.c.bf16 %v383_v24, %v381_v23  ;;  %v610_v23 = vld [vmem:[#allocation7 + $0x128] sm:$0xff] }
  0xa3   :  { %v618_v24 = vld [vmem:[#allocation7 + $0x168] sm:$0xff] }
  0xa4   :  { %v2028_v26 = vpack.c.bf16 %v618_v24, %v610_v23  ;;  %v761_v23 = vld [vmem:[#allocation7 + $0x5e0] sm:$0xff] }
  0xa5   :  { %1939 = vmatpush1.bf16.msra.mxu1 %v1938_v29  ;;  %v385_v29 = vld [vmem:[#allocation5 + $0x2e0] sm:$0xff] }
  0xa6   :  { %1941 = vmatprep.subr.bf16.mxu1 %v1940_v33  ;;  %v392_v33 = vld [vmem:[#allocation5 + $0x318] sm:$0xff] }
 0x133   :  { %v213_v39 = vpop.f32.mrb[0].mxu0 }
 0x134   :  { %v214_v41 = vadd.f32 %v213_v39, %v126_v37  ;;  %v215_v42 = vpop.f32.mrb[1].mxu0  ;;  %v1866_v37 = vpack.c.bf16 %v387_v31, %v385_v29  ;;  %v389_v39 = vld [vmem:[#allocation5 + $0x300] sm:$0xff]  ;;  %v626_v29 = vld [vmem:[#allocation7 + $0x1a8] sm:$0xff] }
 0x135   :  { %v216_v43 = vadd.f32 %v215_v42, %v130_v38  ;;  %v2578_v45 = vpop.f32.mrb[0].mxu1  ;;  %v1868_v38 = vpack.c.bf16 %v392_v33, %v390_v32  ;;  %v394_v42 = vld [vmem:[#allocation5 + $0x328] sm:$0xff] }
 0x136   :  { %v286_v46 = vpop.f32.mrb[1].mxu1  ;;  %v634_v31 = vld [vmem:[#allocation7 + $0x1e8] sm:$0xff] }
 0x137   :  { %2294 = vtanh.f32 %v216_v43  ;;  %v287_v47 = vadd.f32 %v286_v46, %v138_v44  ;;  %v396_v43 = vld [vmem:[#allocation5 + $0x338] sm:$0xff]  ;;  %v2032_v33 = vpack.c.bf16 %v634_v31, %v626_v29  ;;  %v778_v29 = vld [vmem:[#allocation7 + $0x668] sm:$0xff]  ;;  %v769_v31 = vld [vmem:[#allocation7 + $0x620] sm:$0xff] }
 0x138   :  { %2296 = vtanh.f32 %v214_v41  ;;  %v391_v41 = vld [vmem:[#allocation5 + $0x310] sm:$0xff]  ;;  %v1872_v46 = vpack.c.bf16 %v396_v43, %v394_v42 }
 0x139   :  { %2298 = vtanh.f32 %v287_v47  ;;  %v1870_v44 = vpack.c.bf16 %v391_v41, %v389_v39  ;;  %v393_v47 = vld [vmem:[#allocation5 + $0x320] sm:$0xff]  ;;  %v642_v39 = vld [vmem:[#allocation7 + $0x228] sm:$0xff] }
 0x13a   :  { %v1874_v51 = vpack.c.bf16 %v395_v48, %v393_v47  ;;  %v650_v41 = vld [vmem:[#allocation7 + $0x268] sm:$0xff] }
 0x13b   :  { %v2036_v43 = vpack.c.bf16 %v650_v41, %v642_v39  ;;  %v658_v47 = vld [vmem:[#allocation7 + $0x2a8] sm:$0xff] }
 0x13c   :  { %v666_v48 = vld [vmem:[#allocation7 + $0x2e8] sm:$0xff] }
 0x13d   :  { %v790_v39 = vld [vmem:[#allocation7 + $0x6c8] sm:$0xff] }
 0x141   :  { %v2295_v53 = vpop.eup %2294 }
 0x142   :  { %v2297_v57 = vpop.eup %2296  ;;  %493 = vmatprep.mubr.f32.mxu0 %v2295_v53  ;;  %v1876_v53 = vpack.c.bf16 %v400_v50, %v398_v49  ;;  %v2040_v50 = vpack.c.bf16 %v666_v48, %v658_v47  ;;  %v794_v47 = vld [vmem:[#allocation7 + $0x6e8] sm:$0xff]  ;;  %v785_v48 = vld [vmem:[#allocation7 + $0x6a0] sm:$0xff] }
 0x143   :  { %494 = vmatmul.mubr.f32.vlgmr.msra.gmra.mrb[2].mxu0 %v2297_v57  ;;  %v2299_v2 = vpop.eup %2298  ;;  %v404_v57 = vld [vmem:[#allocation5 + $0x378] sm:$0xff] }
 0x144   :  { %1839 = vmatpush1.bf16.msra.mxu0 %v1838_v52  ;;  %1598 = vmatprep.mubr.msk.f32.mxu0 %vm425_vm1, %v2299_v2  ;;  %v133_v52 = vsub.s32 2, %v2557_v30 }
 0x145   :  { %1841 = vmatprep.subr.bf16.mxu0 %v1840_v54  ;;  %v397_v54 = vld [vmem:[#allocation5 + $0x340] sm:$0xff] }
 0x146   :  { %v134_v58 = vrot.slane %v2565_v35, %v133_v52  ;;  %v1878_v59 = vpack.c.bf16 %v399_v55, %v397_v54  ;;  %v674_v54 = vld [vmem:[#allocation7 + $0x328] sm:$0xff] }
 0x147   :  { %v682_v55 = vld [vmem:[#allocation7 + $0x368] sm:$0xff] }
 0x148   :  { %1843 = vmatpush1.bf16.msra.mxu0 %v1842_v60  ;;  %v1880_v60 = vpack.c.bf16 %v404_v57, %v402_v56  ;;  %v285_v1 = vadd.f32 %v2578_v45, %v134_v58  ;;  %v2020_v45 = vpack.c.bf16 %v586_v12, %v578_v11  ;;  %v2044_v57 = vpack.c.bf16 %v682_v55, %v674_v54  ;;  %v673_v58 = vld [vmem:[#allocation7 + $0x320] sm:$0xff]  ;;  %v806_v54 = vld [vmem:[#allocation7 + $0x748] sm:$0xff] }
 0x149   :  { %1845 = vmatprep.subr.bf16.mxu0 %v1844_v61  ;;  %v401_v61 = vld [vmem:[#allocation5 + $0x360] sm:$0xff] }
 0x14a   :  { %v1882_v2 = vpack.c.bf16 %v403_v62, %v401_v61  ;;  %2300 = vtanh.f32 %v285_v1  ;;  %v698_v61 = vld [vmem:[#allocation7 + $0x3e8] sm:$0xff]  ;;  %v697_v1 = vld [vmem:[#allocation7 + $0x3e0] sm:$0xff] }
 0x14b   :  { %v721_v11 = vld [vmem:[#allocation7 + $0x4a0] sm:$0xff] }
 0x14c   :  { %1847 = vmatpush1.bf16.msra.mxu0 %v1846_v3  ;;  %v1884_v3 = vpack.c.bf16 %v408_v0, %v406_v63  ;;  %v689_v0 = vld [vmem:[#allocation7 + $0x3a0] sm:$0xff] }
 0x14d   :  { %1849 = vmatprep.subr.bf16.mxu0 %v1848_v4  ;;  %v405_v4 = vld [vmem:[#allocation5 + $0x380] sm:$0xff] }
 0x14e   :  { %v1886_v35 = vpack.c.bf16 %v407_v5, %v405_v4  ;;  %v2050_v4 = vpack.c.bf16 %v697_v1, %v689_v0  ;;  %v729_v12 = vld [vmem:[#allocation7 + $0x4e0] sm:$0xff]  ;;  %v814_v0 = vld [vmem:[#allocation7 + $0x788] sm:$0xff] }
 0x14f   :  { %v797_v55 = vld [vmem:[#allocation7 + $0x700] sm:$0xff] }
 0x150   :  { %1851 = vmatpush1.bf16.msra.mxu0 %v1850_v9  ;;  %v409_v9 = vld [vmem:[#allocation5 + $0x3a0] sm:$0xff] }
 0x151   :  { %1853 = vmatprep.subr.bf16.mxu0 %v1852_v10  ;;  %v411_v10 = vld [vmem:[#allocation5 + $0x3b0] sm:$0xff] }
 0x152   :  { %v1890_v13 = vpack.c.bf16 %v411_v10, %v409_v9  ;;  %v2054_v9 = vpack.c.bf16 %v713_v7, %v705_v6  ;;  %v818_v7 = vld [vmem:[#allocation7 + $0x7a8] sm:$0xff] }
 0x154   :  { %1855 = vmatpush1.bf16.msra.mxu0 %v1854_v15  ;;  %v585_v15 = vld [vmem:[#allocation7 + $0x60] sm:$0xff] }
 0x155   :  { %1857 = vmatprep.subr.bf16.mxu0 %v1856_v16  ;;  %v594_v16 = vld [vmem:[#allocation7 + $0xa8] sm:$0xff]  ;;  %v2022_v18 = vpack.c.bf16 %v585_v15, %v577_v14  ;;  %v2058_v14 = vpack.c.bf16 %v729_v12, %v721_v11  ;;  %v576_v12 = vld [vmem:[#allocation7 + $0x18] sm:$0xff] }
 0x156   :  { %v2024_v19 = vpack.c.bf16 %v602_v17, %v594_v16  ;;  %v737_v16 = vld [vmem:[#allocation7 + $0x520] sm:$0xff] }
 0x157   :  { %v745_v17 = vld [vmem:[#allocation7 + $0x560] sm:$0xff] }
 0x158   :  { %1859 = vmatpush1.bf16.msra.mxu0 %v1858_v21  ;;  %v601_v21 = vld [vmem:[#allocation7 + $0xe0] sm:$0xff] }
 0x159   :  { %1861 = vmatprep.subr.bf16.mxu0 %v1860_v22  ;;  %v2301_v22 = vpop.eup %2300  ;;  %v2026_v25 = vpack.c.bf16 %v601_v21, %v593_v20  ;;  %v2062_v20 = vpack.c.bf16 %v745_v17, %v737_v16 }
 0x15c   :  { %1863 = vmatpush1.bf16.msra.mxu0 %v1862_v27  ;;  %v609_v27 = vld [vmem:[#allocation7 + $0x120] sm:$0xff] }
 0x15d   :  { %1865 = vmatprep.subr.bf16.mxu0 %v1864_v28  ;;  %v617_v28 = vld [vmem:[#allocation7 + $0x160] sm:$0xff] }
 0x15e   :  { %v2030_v32 = vpack.c.bf16 %v617_v28, %v609_v27  ;;  %v770_v27 = vld [vmem:[#allocation7 + $0x628] sm:$0xff] }
 0x160   :  { %1867 = vmatpush1.bf16.msra.mxu0 %v1866_v37  ;;  %v625_v37 = vld [vmem:[#allocation7 + $0x1a0] sm:$0xff] }
 0x161   :  { %1869 = vmatprep.subr.bf16.mxu0 %v1868_v38  ;;  %v633_v38 = vld [vmem:[#allocation7 + $0x1e0] sm:$0xff] }
 0x162   :  { %v2034_v42 = vpack.c.bf16 %v633_v38, %v625_v37  ;;  %v782_v38 = vld [vmem:[#allocation7 + $0x688] sm:$0xff] }
 0x163   :  { %v1944_v41 = vpack.c.bf16 %v790_v39, %v782_v38  ;;  %v615_v38 = vld [vmem:[#allocation7 + $0x150] sm:$0xff]  ;;  %v1179_v39 = vld [vmem:[#allocation8 + $0x80] sm:$0xff] }
 0x164   :  { %1871 = vmatpush1.bf16.msra.mxu0 %v1870_v44  ;;  %v641_v44 = vld [vmem:[#allocation7 + $0x220] sm:$0xff] }
 0x165   :  { %1873 = vmatprep.subr.bf16.mxu0 %v1872_v46  ;;  %v649_v46 = vld [vmem:[#allocation7 + $0x260] sm:$0xff] }
 0x166   :  { %v2038_v49 = vpack.c.bf16 %v649_v46, %v641_v44  ;;  %v786_v44 = vld [vmem:[#allocation7 + $0x6a8] sm:$0xff] }
 0x168   :  { %1875 = vmatpush1.bf16.msra.mxu0 %v1874_v51  ;;  %v657_v51 = vld [vmem:[#allocation7 + $0x2a0] sm:$0xff] }
 0x169   :  { %1877 = vmatprep.subr.bf16.mxu0 %v1876_v53  ;;  %v665_v53 = vld [vmem:[#allocation7 + $0x2e0] sm:$0xff] }
 0x16a   :  { %v2042_v56 = vpack.c.bf16 %v665_v53, %v657_v51  ;;  %v798_v53 = vld [vmem:[#allocation7 + $0x708] sm:$0xff] }
 0x16c   :  { %1879 = vmatpush1.bf16.msra.mxu0 %v1878_v59  ;;  %v681_v59 = vld [vmem:[#allocation7 + $0x360] sm:$0xff] }
 0x16d   :  { %1881 = vmatprep.subr.bf16.mxu0 %v1880_v60  ;;  %v690_v60 = vld [vmem:[#allocation7 + $0x3a8] sm:$0xff]  ;;  %v2046_v62 = vpack.c.bf16 %v681_v59, %v673_v58 }
 0x16e   :  { %v2048_v63 = vpack.c.bf16 %v698_v61, %v690_v60  ;;  %v802_v58 = vld [vmem:[#allocation7 + $0x728] sm:$0xff] }
 0x16f   :  { %v810_v59 = vld [vmem:[#allocation7 + $0x768] sm:$0xff] }
 0x170   :  { %1883 = vmatpush1.bf16.msra.mxu0 %v1882_v2  ;;  %v706_v2 = vld [vmem:[#allocation7 + $0x428] sm:$0xff]  ;;  %v2076_v61 = vpack.c.bf16 %v810_v59, %v802_v58 }
 0x171   :  { %1885 = vmatprep.subr.bf16.mxu0 %v1884_v3  ;;  %v714_v3 = vld [vmem:[#allocation7 + $0x468] sm:$0xff] }
 0x172   :  { %v2052_v5 = vpack.c.bf16 %v714_v3, %v706_v2  ;;  %v822_v2 = vld [vmem:[#allocation7 + $0x7c8] sm:$0xff]  ;;  %v813_v3 = vld [vmem:[#allocation7 + $0x780] sm:$0xff] }
 0x173   :  { %v1184_v58 = vld [vmem:[#allocation8 + $0xa8] sm:$0xff] }
 0x174   :  { %1887 = vmatpush1.bf16.msra.mxu0 %v1886_v35  ;;  %v722_v35 = vld [vmem:[#allocation7 + $0x4a8] sm:$0xff] }
 0x175   :  { %1889 = vmatprep.subr.bf16.mxu0 %v1888_v8  ;;  %v730_v8 = vld [vmem:[#allocation7 + $0x4e8] sm:$0xff] }
 0x176   :  { %v2056_v10 = vpack.c.bf16 %v730_v8, %v722_v35  ;;  %v826_v35 = vld [vmem:[#allocation7 + $0x7e8] sm:$0xff]  ;;  %v817_v8 = vld [vmem:[#allocation7 + $0x7a0] sm:$0xff] }
 0x178   :  { %1891 = vmatpush1.bf16.msra.mxu0 %v1890_v13  ;;  %v738_v13 = vld [vmem:[#allocation7 + $0x528] sm:$0xff] }
 0x179   :  { %2021 = vmatprep.subr.bf16.mxu0 %v2020_v45  ;;  %v746_v45 = vld [vmem:[#allocation7 + $0x568] sm:$0xff] }
 0x17a   :  { %v2060_v15 = vpack.c.bf16 %v746_v45, %v738_v13  ;;  %v584_v13 = vld [vmem:[#allocation7 + $0x58] sm:$0xff] }
 0x17b   :  { %565 = vmatmul.mubr.f32.vlgmr.msra.gmra.mrb[2].mxu0 %v2301_v22  ;;  %v753_v22 = vld [vmem:[#allocation7 + $0x5a0] sm:$0xff]  ;;  %v1956_v45 = vpack.c.bf16 %v584_v13, %v576_v12  ;;  %v647_v13 = vld [vmem:[#allocation7 + $0x250] sm:$0xff] }
 0x17c   :  { %2023 = vmatpush1.bf16.msra.mxu0 %v2022_v18  ;;  %v754_v18 = vld [vmem:[#allocation7 + $0x5a8] sm:$0xff]  ;;  %v2066_v24 = vpack.c.bf16 %v761_v23, %v753_v22  ;;  %v583_v22 = vld [vmem:[#allocation7 + $0x50] sm:$0xff]  ;;  %v592_v23 = vld [vmem:[#allocation7 + $0x98] sm:$0xff] }
 0x17d   :  { %2025 = vmatprep.subr.bf16.mxu0 %v2024_v19  ;;  %v762_v19 = vld [vmem:[#allocation7 + $0x5e8] sm:$0xff] }
 0x17e   :  { %v2064_v21 = vpack.c.bf16 %v762_v19, %v754_v18 }
 0x180   :  { %2027 = vmatpush1.bf16.msra.mxu0 %v2026_v25  ;;  %v765_v25 = vld [vmem:[#allocation7 + $0x600] sm:$0xff] }
 0x181   :  { %2029 = vmatprep.subr.bf16.mxu0 %v2028_v26  ;;  %v773_v26 = vld [vmem:[#allocation7 + $0x640] sm:$0xff] }
 0x182   :  { %v1942_v28 = vpack.c.bf16 %v773_v26, %v765_v25 }
 0x184   :  { %2031 = vmatpush1.bf16.msra.mxu0 %v2030_v32  ;;  %v777_v32 = vld [vmem:[#allocation7 + $0x660] sm:$0xff]  ;;  %1943 = vmatpush1.bf16.msra.mxu1 %v1942_v28  ;;  %v591_v28 = vld [vmem:[#allocation7 + $0x90] sm:$0xff] }
 0x185   :  { %2033 = vmatprep.subr.bf16.mxu0 %v2032_v33  ;;  %v2068_v33 = vpack.c.bf16 %v778_v29, %v770_v27  ;;  %v2070_v37 = vpack.c.bf16 %v777_v32, %v769_v31  ;;  %1945 = vmatprep.subr.bf16.mxu1 %v1944_v41  ;;  %v599_v29 = vld [vmem:[#allocation7 + $0xd0] sm:$0xff]  ;;  %v608_v32 = vld [vmem:[#allocation7 + $0x118] sm:$0xff]  ;;  %v1180_v41 = vld [vmem:[#allocation8 + $0x88] sm:$0xff] }
 0x188   :  { %2035 = vmatpush1.bf16.msra.mxu0 %v2034_v42  ;;  %v781_v42 = vld [vmem:[#allocation7 + $0x680] sm:$0xff] }
 0x189   :  { %2037 = vmatprep.subr.bf16.mxu0 %v2036_v43  ;;  %v789_v43 = vld [vmem:[#allocation7 + $0x6c0] sm:$0xff] }
 0x18a   :  { %v1946_v46 = vpack.c.bf16 %v789_v43, %v781_v42  ;;  %v1163_v42 = vld [vmem:[#allocation8] sm:$0xff]  ;;  %v1962_v43 = vpack.c.bf16 %v599_v29, %v591_v28  ;;  %v671_v28 = vld [vmem:[#allocation7 + $0x310] sm:$0xff] }
 0x18b   :  { %v679_v29 = vld [vmem:[#allocation7 + $0x350] sm:$0xff] }
 0x18c   :  { %2039 = vmatpush1.bf16.msra.mxu0 %v2038_v49  ;;  %v793_v49 = vld [vmem:[#allocation7 + $0x6e0] sm:$0xff]  ;;  %1947 = vmatpush1.bf16.msra.mxu1 %v1946_v46  ;;  %v1164_v46 = vld [vmem:[#allocation8 + $0x8] sm:$0xff] }
 0x18d   :  { %2041 = vmatprep.subr.bf16.mxu0 %v2040_v50  ;;  %v2072_v50 = vpack.c.bf16 %v794_v47, %v786_v44  ;;  %v2074_v51 = vpack.c.bf16 %v793_v49, %v785_v48  ;;  %v2148_v44 = vpack.c.bf16 %v1180_v41, %v1179_v39  ;;  %v1181_v47 = vld [vmem:[#allocation8 + $0x90] sm:$0xff]  ;;  %v1182_v48 = vld [vmem:[#allocation8 + $0x98] sm:$0xff] }
 0x18e   :  { %v687_v39 = vld [vmem:[#allocation7 + $0x390] sm:$0xff] }
 0x18f   :  { %v695_v41 = vld [vmem:[#allocation7 + $0x3d0] sm:$0xff] }
 0x190   :  { %2043 = vmatpush1.bf16.msra.mxu0 %v2042_v56  ;;  %v1948_v56 = vpack.c.bf16 %v806_v54, %v798_v53  ;;  %v1165_v53 = vld [vmem:[#allocation8 + $0x10] sm:$0xff]  ;;  %v1166_v54 = vld [vmem:[#allocation8 + $0x18] sm:$0xff] }
 0x191   :  { %2045 = vmatprep.subr.bf16.mxu0 %v2044_v57  ;;  %v805_v57 = vld [vmem:[#allocation7 + $0x740] sm:$0xff]  ;;  %v2154_v59 = vpack.c.bf16 %v1166_v54, %v1165_v53  ;;  %v719_v54 = vld [vmem:[#allocation7 + $0x490] sm:$0xff] }
 0x192   :  { %v1950_v60 = vpack.c.bf16 %v805_v57, %v797_v55  ;;  %1949 = vmatprep.subr.bf16.mxu1 %v1948_v56  ;;  %v1183_v55 = vld [vmem:[#allocation8 + $0xa0] sm:$0xff]  ;;  %v624_v56 = vld [vmem:[#allocation7 + $0x198] sm:$0xff] }
 0x193   :  { %v632_v57 = vld [vmem:[#allocation7 + $0x1d8] sm:$0xff] }
 0x194   :  { %2047 = vmatpush1.bf16.msra.mxu0 %v2046_v62  ;;  %v801_v62 = vld [vmem:[#allocation7 + $0x720] sm:$0xff]  ;;  %1951 = vmatpush1.bf16.msra.mxu1 %v1950_v60 }
 0x195   :  { %2049 = vmatprep.subr.bf16.mxu0 %v2048_v63  ;;  %v809_v63 = vld [vmem:[#allocation7 + $0x760] sm:$0xff] }
 0x196   :  { %v2078_v1 = vpack.c.bf16 %v809_v63, %v801_v62  ;;  %v2156_v62 = vpack.c.bf16 %v1184_v58, %v1183_v55  ;;  %v1167_v63 = vld [vmem:[#allocation8 + $0x20] sm:$0xff]  ;;  %v727_v55 = vld [vmem:[#allocation7 + $0x4d0] sm:$0xff] }
 0x197   :  { %v1994_v58 = vpack.c.bf16 %v727_v55, %v719_v54  ;;  %v636_v54 = vld [vmem:[#allocation7 + $0x1f8] sm:$0xff] }
 0x198   :  { %2051 = vmatpush1.bf16.msra.mxu0 %v2050_v4  ;;  %v821_v4 = vld [vmem:[#allocation7 + $0x7c0] sm:$0xff] }
 0x199   :  { %2053 = vmatprep.subr.bf16.mxu0 %v2052_v5  ;;  %v1952_v5 = vpack.c.bf16 %v822_v2, %v814_v0  ;;  %v1954_v6 = vpack.c.bf16 %v821_v4, %v813_v3  ;;  %v1168_v0 = vld [vmem:[#allocation8 + $0x28] sm:$0xff]  ;;  %v631_v2 = vld [vmem:[#allocation7 + $0x1d0] sm:$0xff]  ;;  %v1186_v4 = vld [vmem:[#allocation8 + $0xb8] sm:$0xff] }
 0x19a   :  { %v1185_v3 = vld [vmem:[#allocation8 + $0xb0] sm:$0xff] }
 0x19b   :  { %1953 = vmatprep.subr.bf16.mxu1 %v1952_v5  ;;  %v640_v5 = vld [vmem:[#allocation7 + $0x218] sm:$0xff] }
 0x19c   :  { %2055 = vmatpush1.bf16.msra.mxu0 %v2054_v9  ;;  %v2080_v9 = vpack.c.bf16 %v826_v35, %v818_v7  ;;  %1955 = vmatpush1.bf16.msra.mxu1 %v1954_v6  ;;  %v648_v6 = vld [vmem:[#allocation7 + $0x258] sm:$0xff]  ;;  %v2158_v7 = vpack.c.bf16 %v1168_v0, %v1167_v63 }
 0x19d   :  { %2057 = vmatprep.subr.bf16.mxu0 %v2056_v10  ;;  %v825_v10 = vld [vmem:[#allocation7 + $0x7e0] sm:$0xff]  ;;  %1957 = vmatprep.subr.bf16.mxu1 %v1956_v45  ;;  %v1972_v12 = vpack.c.bf16 %v648_v6, %v640_v5  ;;  %v760_v63 = vld [vmem:[#allocation7 + $0x5d8] sm:$0xff] }
 0x19e   :  { %v2082_v11 = vpack.c.bf16 %v825_v10, %v817_v8  ;;  %v639_v8 = vld [vmem:[#allocation7 + $0x210] sm:$0xff]  ;;  %v1187_v45 = vld [vmem:[#allocation8 + $0xc0] sm:$0xff]  ;;  %v776_v5 = vld [vmem:[#allocation7 + $0x658] sm:$0xff] }
 0x19f   :  { %v1169_v10 = vld [vmem:[#allocation8 + $0x30] sm:$0xff] }
 0x1a0   :  { %2059 = vmatpush1.bf16.msra.mxu0 %v2058_v14  ;;  %v413_v14 = vld [vmem:[%s2644_s4] sm:$0x3] }
 0x1a1   :  { %2061 = vmatprep.subr.bf16.mxu0 %v2060_v15  ;;  %v418_v15 = vrot.slane %v413_v14, %v2560_v34  ;;  %v422_v16 = vrot.slane %v413_v14, %v2568_v36  ;;  %v1188_v14 = vld [vmem:[#allocation8 + $0xc8] sm:$0xff] }
 0x1a4   :  { %2063 = vmatpush1.bf16.msra.mxu0 %v2062_v20 }
 0x1a5   :  { %2065 = vmatprep.subr.bf16.mxu0 %v2064_v21  ;;  %v575_v21 = vld [vmem:[#allocation7 + $0x10] sm:$0xff] }
 0x1a6   :  { %v1958_v25 = vpack.c.bf16 %v583_v22, %v575_v21  ;;  %v655_v21 = vld [vmem:[#allocation7 + $0x290] sm:$0xff] }
 0x1a7   :  { %v663_v22 = vld [vmem:[#allocation7 + $0x2d0] sm:$0xff] }
 0x1a8   :  { %2067 = vmatpush1.bf16.msra.mxu0 %v2066_v24  ;;  %v600_v24 = vld [vmem:[#allocation7 + $0xd8] sm:$0xff] }
 0x1a9   :  { %2069 = vmatprep.subr.bf16.mxu0 %v2068_v33  ;;  %v1960_v27 = vpack.c.bf16 %v600_v24, %v592_v23  ;;  %v616_v33 = vld [vmem:[#allocation7 + $0x158] sm:$0xff] }
 0x1aa   :  { %v1964_v49 = vpack.c.bf16 %v616_v33, %v608_v32  ;;  %v672_v23 = vld [vmem:[#allocation7 + $0x318] sm:$0xff] }
 0x1ab   :  { %v680_v24 = vld [vmem:[#allocation7 + $0x358] sm:$0xff] }
 0x1ac   :  { %2071 = vmatpush1.bf16.msra.mxu0 %v2070_v37  ;;  %v607_v37 = vld [vmem:[#allocation7 + $0x110] sm:$0xff]  ;;  %v688_v32 = vld [vmem:[#allocation7 + $0x398] sm:$0xff] }
 0x1ad   :  { %2073 = vmatprep.subr.bf16.mxu0 %v2072_v50  ;;  %v2150_v50 = vpack.c.bf16 %v1164_v46, %v1163_v42  ;;  %v1966_v60 = vpack.c.bf16 %v615_v38, %v607_v37  ;;  %v696_v33 = vld [vmem:[#allocation7 + $0x3d8] sm:$0xff]  ;;  %v1982_v37 = vpack.c.bf16 %v679_v29, %v671_v28 }
 0x1ae   :  { %v1984_v38 = vpack.c.bf16 %v696_v33, %v688_v32  ;;  %v704_v42 = vld [vmem:[#allocation7 + $0x418] sm:$0xff]  ;;  %v579_v33 = vld [vmem:[#allocation7 + $0x30] sm:$0xff] }
 0x1af   :  { %v588_v28 = vld [vmem:[#allocation7 + $0x78] sm:$0xff] }
 0x1b0   :  { %2075 = vmatpush1.bf16.msra.mxu0 %v2074_v51  ;;  %v2152_v51 = vpack.c.bf16 %v1182_v48, %v1181_v47  ;;  %v703_v47 = vld [vmem:[#allocation7 + $0x410] sm:$0xff] }
 0x1b1   :  { %2077 = vmatprep.subr.bf16.mxu0 %v2076_v61  ;;  %v623_v61 = vld [vmem:[#allocation7 + $0x190] sm:$0xff] }
 0x1b2   :  { %v1970_v35 = vpack.c.bf16 %v631_v2, %v623_v61  ;;  %v711_v48 = vld [vmem:[#allocation7 + $0x450] sm:$0xff] }
 0x1b3   :  { %v743_v61 = vld [vmem:[#allocation7 + $0x550] sm:$0xff] }
 0x1b4   :  { %2079 = vmatpush1.bf16.msra.mxu0 %v2078_v1  ;;  %v1968_v1 = vpack.c.bf16 %v632_v57, %v624_v56  ;;  %v736_v56 = vld [vmem:[#allocation7 + $0x518] sm:$0xff]  ;;  %v751_v2 = vld [vmem:[#allocation7 + $0x590] sm:$0xff] }
 0x1b5   :  { %2081 = vmatprep.subr.bf16.mxu0 %v2080_v9  ;;  %v2160_v9 = vpack.c.bf16 %v1186_v4, %v1185_v3  ;;  %v744_v57 = vld [vmem:[#allocation7 + $0x558] sm:$0xff]  ;;  %v759_v3 = vld [vmem:[#allocation7 + $0x5d0] sm:$0xff] }
 0x1b6   :  { %v768_v4 = vld [vmem:[#allocation7 + $0x618] sm:$0xff]  ;;  %v2002_v6 = vpack.c.bf16 %v759_v3, %v751_v2 }
 0x1b8   :  { %2083 = vmatpush1.bf16.msra.mxu0 %v2082_v11  ;;  %v1170_v11 = vld [vmem:[#allocation8 + $0x38] sm:$0xff] }
 0x1b9   :  { %2149 = vmatprep.subr.bf16.mxu0 %v2148_v44  ;;  %v1986_v44 = vpack.c.bf16 %v695_v41, %v687_v39  ;;  %v604_v39 = vld [vmem:[#allocation7 + $0xf8] sm:$0xff] }
 0x24e   :  { %v566_v17 = vpop.f32.mrb[2].mxu0 }
 0x24f   :  { %v2276_v18 = vadd.f32 %v566_v17, %v418_v15  ;;  %v568_v19 = vpop.f32.mrb[3].mxu0  ;;  %v656_v15 = vld [vmem:[#allocation7 + $0x298] sm:$0xff]  ;;  %v2162_v17 = vpack.c.bf16 %v1170_v11, %v1169_v10 }
 0x250   :  { %v2277_v20 = vadd.f32 %v568_v19, %v422_v16  ;;  %v664_v16 = vld [vmem:[#allocation7 + $0x2d8] sm:$0xff]  ;;  %v2164_v19 = vpack.c.bf16 %v1188_v14, %v1187_v45  ;;  %v791_v45 = vld [vmem:[#allocation7 + $0x6d0] sm:$0xff] }
 0x251   :  { %v792_v10 = vld [vmem:[#allocation7 + $0x6d8] sm:$0xff] }
 0x252   :  { %2302 = vtanh.f32 %v2277_v20  ;;  %v1976_v20 = vpack.c.bf16 %v664_v16, %v656_v15  ;;  %v800_v14 = vld [vmem:[#allocation7 + $0x718] sm:$0xff] }
 0x253   :  { %2304 = vtanh.f32 %v2276_v18  ;;  %v1974_v18 = vpack.c.bf16 %v647_v13, %v639_v8  ;;  %v775_v8 = vld [vmem:[#allocation7 + $0x650] sm:$0xff]  ;;  %v808_v15 = vld [vmem:[#allocation7 + $0x758] sm:$0xff] }
 0x254   :  { %v783_v13 = vld [vmem:[#allocation7 + $0x690] sm:$0xff] }
 0x255   :  { %v2010_v16 = vpack.c.bf16 %v791_v45, %v783_v13  ;;  %v692_v45 = vld [vmem:[#allocation7 + $0x3b8] sm:$0xff] }
 0x25c   :  { %v2590_v26 = vpop.eup %2302 }
 0x25d   :  { %v2592_v31 = vpop.eup %2304  ;;  %935 = vmatprep.mubr.f32.mxu1 %v2590_v26  ;;  %1077 = vmatprep.mubr.f32.mxu0 %v2590_v26 }
 0x25e   :  { %936 = vmatmul.mubr.f32.vlgmr.msra.gmra.mrb[2].mxu1 %v2592_v31  ;;  %1078 = vmatmul.mubr.f32.vlgmr.msra.gmra.mrb[4].mxu0 %v2592_v31 }
 0x25f   :  { %1959 = vmatpush1.bf16.msra.mxu1 %v1958_v25  ;;  %1006 = vmatprep.mubr.f32.mxu1 %v2590_v26  ;;  %v1978_v25 = vpack.c.bf16 %v663_v22, %v655_v21  ;;  %v824_v21 = vld [vmem:[#allocation7 + $0x7d8] sm:$0xff] }
 0x260   :  { %1961 = vmatprep.subr.bf16.mxu1 %v1960_v27  ;;  %2151 = vmatpush3.bf16.msra.mxu0 %v2150_v50  ;;  %v1980_v27 = vpack.c.bf16 %v680_v24, %v672_v23  ;;  %v728_v50 = vld [vmem:[#allocation7 + $0x4d8] sm:$0xff]  ;;  %v815_v24 = vld [vmem:[#allocation7 + $0x790] sm:$0xff] }
 0x261   :  { %2153 = vmatprep.subr.bf16.mxu0 %v2152_v51  ;;  %v1990_v51 = vpack.c.bf16 %v711_v48, %v703_v47  ;;  %v620_v47 = vld [vmem:[#allocation7 + $0x178] sm:$0xff] }
 0x263   :  { %1963 = vmatpush1.bf16.msra.mxu1 %v1962_v43  ;;  %v712_v43 = vld [vmem:[#allocation7 + $0x458] sm:$0xff] }
 0x264   :  { %1965 = vmatprep.subr.bf16.mxu1 %v1964_v49  ;;  %2155 = vmatpush3.bf16.msra.mxu0 %v2154_v59  ;;  %v1988_v46 = vpack.c.bf16 %v712_v43, %v704_v42  ;;  %v720_v49 = vld [vmem:[#allocation7 + $0x498] sm:$0xff]  ;;  %v1996_v59 = vpack.c.bf16 %v744_v57, %v736_v56  ;;  %v595_v43 = vld [vmem:[#allocation7 + $0xb0] sm:$0xff] }
 0x265   :  { %2157 = vmatprep.subr.bf16.mxu0 %v2156_v62  ;;  %v1992_v53 = vpack.c.bf16 %v728_v50, %v720_v49  ;;  %v752_v62 = vld [vmem:[#allocation7 + $0x598] sm:$0xff]  ;;  %v611_v50 = vld [vmem:[#allocation7 + $0x130] sm:$0xff] }
 0x266   :  { %v627_v57 = vld [vmem:[#allocation7 + $0x1b0] sm:$0xff] }
 0x267   :  { %1967 = vmatpush1.bf16.msra.mxu1 %v1966_v60  ;;  %v735_v60 = vld [vmem:[#allocation7 + $0x510] sm:$0xff] }
 0x268   :  { %1969 = vmatprep.subr.bf16.mxu1 %v1968_v1  ;;  %2159 = vmatpush3.bf16.msra.mxu0 %v2158_v7  ;;  %v1998_v0 = vpack.c.bf16 %v743_v61, %v735_v60  ;;  %v2000_v1 = vpack.c.bf16 %v760_v63, %v752_v62  ;;  %v2004_v7 = vpack.c.bf16 %v776_v5, %v768_v4  ;;  %v652_v60 = vld [vmem:[#allocation7 + $0x278] sm:$0xff]  ;;  %v651_v63 = vld [vmem:[#allocation7 + $0x270] sm:$0xff] }
 0x269   :  { %2161 = vmatprep.subr.bf16.mxu0 %v2160_v9  ;;  %v784_v9 = vld [vmem:[#allocation7 + $0x698] sm:$0xff]  ;;  %v659_v4 = vld [vmem:[#allocation7 + $0x2b0] sm:$0xff] }
 0x26a   :  { %v667_v5 = vld [vmem:[#allocation7 + $0x2f0] sm:$0xff] }
 0x26b   :  { %1971 = vmatpush1.bf16.msra.mxu1 %v1970_v35  ;;  %v767_v35 = vld [vmem:[#allocation7 + $0x610] sm:$0xff] }
 0x26c   :  { %1973 = vmatprep.subr.bf16.mxu1 %v1972_v12  ;;  %2163 = vmatpush3.bf16.msra.mxu0 %v2162_v17  ;;  %v2006_v11 = vpack.c.bf16 %v775_v8, %v767_v35  ;;  %v2008_v12 = vpack.c.bf16 %v792_v10, %v784_v9  ;;  %v2012_v17 = vpack.c.bf16 %v808_v15, %v800_v14  ;;  %v1171_v8 = vld [vmem:[#allocation8 + $0x40] sm:$0xff]  ;;  %v1172_v9 = vld [vmem:[#allocation8 + $0x48] sm:$0xff]  ;;  %v700_v14 = vld [vmem:[#allocation7 + $0x3f8] sm:$0xff] }
 0x26d   :  { %2165 = vmatprep.subr.bf16.mxu0 %v2164_v19  ;;  %v807_v19 = vld [vmem:[#allocation7 + $0x750] sm:$0xff]  ;;  %v2106_v35 = vpack.c.bf16 %v667_v5, %v659_v4  ;;  %v2166_v13 = vpack.c.bf16 %v1172_v9, %v1171_v8  ;;  %v780_v8 = vld [vmem:[#allocation7 + $0x678] sm:$0xff] }
 0x26f   :  { %1975 = vmatpush1.bf16.msra.mxu1 %v1974_v18  ;;  %v799_v18 = vld [vmem:[#allocation7 + $0x710] sm:$0xff] }
 0x270   :  { %1977 = vmatprep.subr.bf16.mxu1 %v1976_v20  ;;  %v816_v20 = vld [vmem:[#allocation7 + $0x798] sm:$0xff]  ;;  %v2014_v22 = vpack.c.bf16 %v807_v19, %v799_v18  ;;  %2167 = vmatpush3.bf16.msra.mxu0 %v2166_v13  ;;  %v2112_v19 = vpack.c.bf16 %v700_v14, %v692_v45 }
 0x271   :  { %v2016_v23 = vpack.c.bf16 %v824_v21, %v816_v20  ;;  %v1190_v18 = vld [vmem:[#allocation8 + $0xd8] sm:$0xff]  ;;  %v699_v20 = vld [vmem:[#allocation7 + $0x3f0] sm:$0xff] }
 0x272   :  { %v788_v13 = vld [vmem:[#allocation7 + $0x6b8] sm:$0xff] }
 0x273   :  { %1979 = vmatpush1.bf16.msra.mxu1 %v1978_v25  ;;  %v823_v25 = vld [vmem:[#allocation7 + $0x7d0] sm:$0xff]  ;;  %v796_v45 = vld [vmem:[#allocation7 + $0x6f8] sm:$0xff] }
 0x274   :  { %1981 = vmatprep.subr.bf16.mxu1 %v1980_v27  ;;  %v580_v27 = vld [vmem:[#allocation7 + $0x38] sm:$0xff]  ;;  %v2018_v29 = vpack.c.bf16 %v823_v25, %v815_v24 }
 0x275   :  { %v2084_v32 = vpack.c.bf16 %v588_v28, %v580_v27  ;;  %v708_v24 = vld [vmem:[#allocation7 + $0x438] sm:$0xff]  ;;  %v707_v28 = vld [vmem:[#allocation7 + $0x430] sm:$0xff] }
 0x276   :  { %v716_v25 = vld [vmem:[#allocation7 + $0x478] sm:$0xff] }
 0x277   :  { %1983 = vmatpush1.bf16.msra.mxu1 %v1982_v37  ;;  %v587_v37 = vld [vmem:[#allocation7 + $0x70] sm:$0xff] }
 0x278   :  { %1985 = vmatprep.subr.bf16.mxu1 %v1984_v38  ;;  %v596_v38 = vld [vmem:[#allocation7 + $0xb8] sm:$0xff]  ;;  %v2086_v41 = vpack.c.bf16 %v587_v37, %v579_v33  ;;  %v1191_v37 = vld [vmem:[#allocation8 + $0xe0] sm:$0xff] }
 0x279   :  { %v2088_v42 = vpack.c.bf16 %v604_v39, %v596_v38  ;;  %v724_v33 = vld [vmem:[#allocation7 + $0x4b8] sm:$0xff]  ;;  %v1192_v38 = vld [vmem:[#allocation8 + $0xe8] sm:$0xff]  ;;  %v1175_v39 = vld [vmem:[#allocation8 + $0x60] sm:$0xff] }
 0x27b   :  { %1987 = vmatpush1.bf16.msra.mxu1 %v1986_v44  ;;  %v603_v44 = vld [vmem:[#allocation7 + $0xf0] sm:$0xff] }
 0x27c   :  { %1989 = vmatprep.subr.bf16.mxu1 %v1988_v46  ;;  %v612_v46 = vld [vmem:[#allocation7 + $0x138] sm:$0xff]  ;;  %v2090_v48 = vpack.c.bf16 %v603_v44, %v595_v43  ;;  %v1176_v43 = vld [vmem:[#allocation8 + $0x68] sm:$0xff]  ;;  %v1193_v44 = vld [vmem:[#allocation8 + $0xf0] sm:$0xff] }
 0x27d   :  { %v2092_v49 = vpack.c.bf16 %v620_v47, %v612_v46  ;;  %v1194_v46 = vld [vmem:[#allocation8 + $0xf8] sm:$0xff] }
 0x27e   :  { %v732_v47 = vld [vmem:[#allocation7 + $0x4f8] sm:$0xff] }
 0x27f   :  { %1991 = vmatpush1.bf16.msra.mxu1 %v1990_v51  ;;  %v619_v51 = vld [vmem:[#allocation7 + $0x170] sm:$0xff] }
 0x280   :  { %1993 = vmatprep.subr.bf16.mxu1 %v1992_v53  ;;  %v628_v53 = vld [vmem:[#allocation7 + $0x1b8] sm:$0xff]  ;;  %v2094_v55 = vpack.c.bf16 %v619_v51, %v611_v50  ;;  %v1177_v50 = vld [vmem:[#allocation8 + $0x70] sm:$0xff] }
 0x281   :  { %v2096_v56 = vpack.c.bf16 %v636_v54, %v628_v53  ;;  %v1178_v51 = vld [vmem:[#allocation8 + $0x78] sm:$0xff] }
 0x282   :  { %v2178_v54 = vpack.c.bf16 %v1178_v51, %v1177_v50  ;;  %v1215_v50 = vld [vmem:[#allocation8 + $0x1a0] sm:$0xff]  ;;  %v1216_v51 = vld [vmem:[#allocation8 + $0x1a8] sm:$0xff] }
 0x283   :  { %1995 = vmatpush1.bf16.msra.mxu1 %v1994_v58  ;;  %v635_v58 = vld [vmem:[#allocation7 + $0x1f0] sm:$0xff] }
 0x284   :  { %1997 = vmatprep.subr.bf16.mxu1 %v1996_v59  ;;  %v644_v59 = vld [vmem:[#allocation7 + $0x238] sm:$0xff]  ;;  %v2098_v61 = vpack.c.bf16 %v635_v58, %v627_v57  ;;  %v731_v57 = vld [vmem:[#allocation7 + $0x4f0] sm:$0xff] }
 0x285   :  { %v2100_v62 = vpack.c.bf16 %v652_v60, %v644_v59  ;;  %v740_v58 = vld [vmem:[#allocation7 + $0x538] sm:$0xff] }
 0x286   :  { %v748_v59 = vld [vmem:[#allocation7 + $0x578] sm:$0xff] }
 0x287   :  { %1999 = vmatpush1.bf16.msra.mxu1 %v1998_v0  ;;  %v660_v0 = vld [vmem:[#allocation7 + $0x2b8] sm:$0xff] }
 0x288   :  { %2001 = vmatprep.subr.bf16.mxu1 %v2000_v1  ;;  %v668_v1 = vld [vmem:[#allocation7 + $0x2f8] sm:$0xff] }
 0x289   :  { %v2104_v3 = vpack.c.bf16 %v668_v1, %v660_v0  ;;  %v747_v0 = vld [vmem:[#allocation7 + $0x570] sm:$0xff] }
 0x28b   :  { %2003 = vmatpush1.bf16.msra.mxu1 %v2002_v6  ;;  %v676_v6 = vld [vmem:[#allocation7 + $0x338] sm:$0xff] }
 0x28c   :  { %2005 = vmatprep.subr.bf16.mxu1 %v2004_v7  ;;  %v684_v7 = vld [vmem:[#allocation7 + $0x378] sm:$0xff] }
 0x28d   :  { %v2108_v10 = vpack.c.bf16 %v684_v7, %v676_v6  ;;  %v755_v6 = vld [vmem:[#allocation7 + $0x5b0] sm:$0xff] }
 0x28e   :  { %v763_v7 = vld [vmem:[#allocation7 + $0x5f0] sm:$0xff] }
 0x28f   :  { %2007 = vmatpush1.bf16.msra.mxu1 %v2006_v11  ;;  %v675_v11 = vld [vmem:[#allocation7 + $0x330] sm:$0xff]  ;;  %v2130_v9 = vpack.c.bf16 %v763_v7, %v755_v6 }
 0x290   :  { %2009 = vmatprep.subr.bf16.mxu1 %v2008_v12  ;;  %v683_v12 = vld [vmem:[#allocation7 + $0x370] sm:$0xff] }
 0x291   :  { %v2110_v15 = vpack.c.bf16 %v683_v12, %v675_v11  ;;  %v771_v11 = vld [vmem:[#allocation7 + $0x630] sm:$0xff] }
 0x292   :  { %v779_v12 = vld [vmem:[#allocation7 + $0x670] sm:$0xff] }
 0x293   :  { %2011 = vmatpush1.bf16.msra.mxu1 %v2010_v16  ;;  %v691_v16 = vld [vmem:[#allocation7 + $0x3b0] sm:$0xff]  ;;  %v2134_v14 = vpack.c.bf16 %v779_v12, %v771_v11  ;;  %v1207_v11 = vld [vmem:[#allocation8 + $0x160] sm:$0xff] }
 0x294   :  { %2013 = vmatprep.subr.bf16.mxu1 %v2012_v17  ;;  %v1189_v17 = vld [vmem:[#allocation8 + $0xd0] sm:$0xff] }
 0x295   :  { %v2168_v21 = vpack.c.bf16 %v1190_v18, %v1189_v17  ;;  %v795_v17 = vld [vmem:[#allocation7 + $0x6f0] sm:$0xff]  ;;  %v804_v18 = vld [vmem:[#allocation7 + $0x738] sm:$0xff] }
 0x296   :  { %v1205_v7 = vld [vmem:[#allocation8 + $0x150] sm:$0xff] }
 0x297   :  { %2015 = vmatpush1.bf16.msra.mxu1 %v2014_v22  ;;  %v1173_v22 = vld [vmem:[#allocation8 + $0x50] sm:$0xff]  ;;  %2169 = vmatprep.subr.bf16.mxu0 %v2168_v21 }
 0x298   :  { %2017 = vmatprep.subr.bf16.mxu1 %v2016_v23  ;;  %v1174_v23 = vld [vmem:[#allocation8 + $0x58] sm:$0xff] }
 0x299   :  { %v2170_v27 = vpack.c.bf16 %v1174_v23, %v1173_v22  ;;  %v803_v22 = vld [vmem:[#allocation7 + $0x730] sm:$0xff] }
 0x29a   :  { %v811_v23 = vld [vmem:[#allocation7 + $0x770] sm:$0xff] }
 0x29b   :  { %2019 = vmatpush1.bf16.msra.mxu1 %v2018_v29  ;;  %v715_v29 = vld [vmem:[#allocation7 + $0x470] sm:$0xff]  ;;  %2171 = vmatpush3.bf16.msra.mxu0 %v2170_v27  ;;  %v2142_v27 = vpack.c.bf16 %v811_v23, %v803_v22  ;;  %v2605_v23 = vld [vmem:[%s2646_s6] sm:$0xff] }
 0x29c   :  { %2085 = vmatprep.subr.bf16.mxu1 %v2084_v32  ;;  %v2114_v32 = vpack.c.bf16 %v699_v20, %v691_v16  ;;  %v2118_v53 = vpack.c.bf16 %v715_v29, %v707_v28  ;;  %v787_v16 = vld [vmem:[#allocation7 + $0x6b0] sm:$0xff] }
 0x29d   :  { %v2138_v20 = vpack.c.bf16 %v795_v17, %v787_v16  ;;  %v819_v29 = vld [vmem:[#allocation7 + $0x7b0] sm:$0xff] }
 0x29e   :  { %1007 = vmatmul.mubr.f32.vlgmr.msra.gmra.mrb[4].mxu1 %v2592_v31  ;;  %v1209_v17 = vld [vmem:[#allocation8 + $0x170] sm:$0xff] }
 0x29f   :  { %2087 = vmatpush1.bf16.msra.mxu1 %v2086_v41  ;;  %1148 = vmatprep.mubr.f32.mxu1 %v2590_v26  ;;  %v643_v26 = vld [vmem:[#allocation7 + $0x230] sm:$0xff]  ;;  %v2116_v41 = vpack.c.bf16 %v716_v25, %v708_v24  ;;  %v820_v24 = vld [vmem:[#allocation7 + $0x7b8] sm:$0xff] }
 0x2a0   :  { %2089 = vmatprep.subr.bf16.mxu1 %v2088_v42  ;;  %v2102_v2 = vpack.c.bf16 %v651_v63, %v643_v26  ;;  %v2172_v42 = vpack.c.bf16 %v1192_v38, %v1191_v37  ;;  %v2124_v26 = vpack.c.bf16 %v748_v59, %v740_v58  ;;  %v739_v63 = vld [vmem:[#allocation7 + $0x530] sm:$0xff]  ;;  %v828_v25 = vld [vmem:[#allocation7 + $0x7f8] sm:$0xff]  ;;  %v1211_v37 = vld [vmem:[#allocation8 + $0x180] sm:$0xff] }
 0x2a1   :  { %v2126_v4 = vpack.c.bf16 %v747_v0, %v739_v63  ;;  %v2144_v28 = vpack.c.bf16 %v828_v25, %v820_v24  ;;  %v1212_v38 = vld [vmem:[#allocation8 + $0x188] sm:$0xff]  ;;  %v853_v24 = vsub.s32 5, %v2557_v30  ;;  %v834_v25 = vrot.slane %v2605_v23, %v2560_v34 }
 0x2a2   :  { %2173 = vmatprep.subr.bf16.mxu0 %v2172_v42  ;;  %v1196_v42 = vld [vmem:[#allocation8 + $0x108] sm:$0xff] }
 0x2a3   :  { %2091 = vmatpush1.bf16.msra.mxu1 %v2090_v48  ;;  %v2174_v48 = vpack.c.bf16 %v1176_v43, %v1175_v39  ;;  %v2180_v39 = vpack.c.bf16 %v1212_v38, %v1211_v37  ;;  %v1220_v63 = vld [vmem:[#allocation8 + $0x1c8] sm:$0xff] }
 0x2a4   :  { %2093 = vmatprep.subr.bf16.mxu1 %v2092_v49  ;;  %v2176_v49 = vpack.c.bf16 %v1194_v46, %v1193_v44  ;;  %v1213_v44 = vld [vmem:[#allocation8 + $0x190] sm:$0xff]  ;;  %v1214_v46 = vld [vmem:[#allocation8 + $0x198] sm:$0xff] }
 0x2a5   :  { %2175 = vmatpush3.bf16.msra.mxu0 %v2174_v48  ;;  %v2184_v48 = vpack.c.bf16 %v1214_v46, %v1213_v44  ;;  %v1245_v44 = vld [vmem:[#allocation8 + $0x290] sm:$0xff]  ;;  %v1246_v46 = vld [vmem:[#allocation8 + $0x298] sm:$0xff] }
 0x2a6   :  { %2177 = vmatprep.subr.bf16.mxu0 %v2176_v49  ;;  %v1198_v49 = vld [vmem:[#allocation8 + $0x118] sm:$0xff] }
 0x2a7   :  { %2095 = vmatpush1.bf16.msra.mxu1 %v2094_v55  ;;  %v2120_v55 = vpack.c.bf16 %v732_v47, %v724_v33  ;;  %v1197_v47 = vld [vmem:[#allocation8 + $0x110] sm:$0xff] }
 0x2a8   :  { %2097 = vmatprep.subr.bf16.mxu1 %v2096_v56  ;;  %v723_v56 = vld [vmem:[#allocation7 + $0x4b0] sm:$0xff] }
 0x2a9   :  { %v2122_v60 = vpack.c.bf16 %v731_v57, %v723_v56  ;;  %2179 = vmatpush3.bf16.msra.mxu0 %v2178_v54  ;;  %v2188_v54 = vpack.c.bf16 %v1216_v51, %v1215_v50  ;;  %v1200_v56 = vld [vmem:[#allocation8 + $0x128] sm:$0xff]  ;;  %v1218_v57 = vld [vmem:[#allocation8 + $0x1b8] sm:$0xff]  ;;  %v1247_v51 = vld [vmem:[#allocation8 + $0x2a0] sm:$0xff] }
 0x2ab   :  { %2099 = vmatpush1.bf16.msra.mxu1 %v2098_v61  ;;  %v1243_v61 = vld [vmem:[#allocation8 + $0x280] sm:$0xff] }
 0x2ac   :  { %2101 = vmatprep.subr.bf16.mxu1 %v2100_v62  ;;  %v1244_v62 = vld [vmem:[#allocation8 + $0x288] sm:$0xff] }
 0x2ad   :  { %v2212_v1 = vpack.c.bf16 %v1244_v62, %v1243_v61  ;;  %v1202_v61 = vld [vmem:[#allocation8 + $0x138] sm:$0xff] }
 0x2af   :  { %2103 = vmatpush1.bf16.msra.mxu1 %v2102_v2  ;;  %v756_v2 = vld [vmem:[#allocation7 + $0x5b8] sm:$0xff]  ;;  %2213 = vmatprep.subr.bf16.mxu0 %v2212_v1  ;;  %v1203_v1 = vld [vmem:[#allocation8 + $0x140] sm:$0xff] }
 0x2b0   :  { %2105 = vmatprep.subr.bf16.mxu1 %v2104_v3  ;;  %v764_v3 = vld [vmem:[#allocation7 + $0x5f8] sm:$0xff] }
 0x2b1   :  { %v2128_v5 = vpack.c.bf16 %v764_v3, %v756_v2  ;;  %v1204_v2 = vld [vmem:[#allocation8 + $0x148] sm:$0xff] }
 0x2b2   :  { %v2198_v3 = vpack.c.bf16 %v1204_v2, %v1203_v1  ;;  %v849_v1 = vsub.s32 4, %v2557_v30 }
 0x2b3   :  { %2107 = vmatpush1.bf16.msra.mxu1 %v2106_v35  ;;  %v772_v35 = vld [vmem:[#allocation7 + $0x638] sm:$0xff] }
 0x2b4   :  { %2109 = vmatprep.subr.bf16.mxu1 %v2108_v10  ;;  %v2132_v10 = vpack.c.bf16 %v780_v8, %v772_v35  ;;  %v1206_v35 = vld [vmem:[#allocation8 + $0x158] sm:$0xff] }
 0x2b5   :  { %v2202_v8 = vpack.c.bf16 %v1206_v35, %v1205_v7  ;;  %v1254_v7 = vld [vmem:[#allocation8 + $0x2d8] sm:$0xff]  ;;  %v850_v35 = vrot.slane %v2605_v23, %v849_v1 }
 0x2b6   :  { %v1286_v1 = vld [vmem:[#allocation8 + $0x3d8] sm:$0xff] }
 0x2b7   :  { %2111 = vmatpush1.bf16.msra.mxu1 %v2110_v15  ;;  %v2136_v15 = vpack.c.bf16 %v796_v45, %v788_v13  ;;  %v1208_v13 = vld [vmem:[#allocation8 + $0x168] sm:$0xff]  ;;  %v1225_v45 = vld [vmem:[#allocation8 + $0x1f0] sm:$0xff] }
 0x2b8   :  { %2113 = vmatprep.subr.bf16.mxu1 %v2112_v19  ;;  %v812_v19 = vld [vmem:[#allocation7 + $0x778] sm:$0xff] }
 0x2b9   :  { %v2140_v21 = vpack.c.bf16 %v812_v19, %v804_v18  ;;  %v1210_v18 = vld [vmem:[#allocation8 + $0x178] sm:$0xff] }
 0x2ba   :  { %v2210_v19 = vpack.c.bf16 %v1210_v18, %v1209_v17  ;;  %v1240_v17 = vld [vmem:[#allocation8 + $0x268] sm:$0xff]  ;;  %v1257_v18 = vld [vmem:[#allocation8 + $0x2f0] sm:$0xff] }
 0x2bb   :  { %2115 = vmatpush1.bf16.msra.mxu1 %v2114_v32  ;;  %v827_v32 = vld [vmem:[#allocation7 + $0x7f0] sm:$0xff] }
 0x2bc   :  { %2117 = vmatprep.subr.bf16.mxu1 %v2116_v41  ;;  %v2146_v33 = vpack.c.bf16 %v827_v32, %v819_v29  ;;  %v1195_v41 = vld [vmem:[#allocation8 + $0x100] sm:$0xff] }
 0x2bd   :  { %v2182_v43 = vpack.c.bf16 %v1196_v42, %v1195_v41  ;;  %v1227_v42 = vld [vmem:[#allocation8 + $0x200] sm:$0xff] }
 0x2bf   :  { %2119 = vmatpush1.bf16.msra.mxu1 %v2118_v53  ;;  %v2186_v53 = vpack.c.bf16 %v1198_v49, %v1197_v47  ;;  %v1230_v49 = vld [vmem:[#allocation8 + $0x218] sm:$0xff] }
 0x2c0   :  { %2121 = vmatprep.subr.bf16.mxu1 %v2120_v55  ;;  %v1199_v55 = vld [vmem:[#allocation8 + $0x120] sm:$0xff] }
 0x2c1   :  { %v2190_v58 = vpack.c.bf16 %v1200_v56, %v1199_v55 }
 0x2c3   :  { %2123 = vmatpush1.bf16.msra.mxu1 %v2122_v60  ;;  %v1201_v60 = vld [vmem:[#allocation8 + $0x130] sm:$0xff] }
 0x2c4   :  { %2125 = vmatprep.subr.bf16.mxu1 %v2124_v26  ;;  %v2194_v62 = vpack.c.bf16 %v1202_v61, %v1201_v60  ;;  %v1219_v26 = vld [vmem:[#allocation8 + $0x1c0] sm:$0xff] }
 0x2c5   :  { %v2196_v0 = vpack.c.bf16 %v1220_v63, %v1219_v26  ;;  %v1234_v26 = vld [vmem:[#allocation8 + $0x238] sm:$0xff]  ;;  %v1251_v63 = vld [vmem:[#allocation8 + $0x2c0] sm:$0xff] }
 0x2c7   :  { %2127 = vmatpush1.bf16.msra.mxu1 %v2126_v4  ;;  %v1221_v4 = vld [vmem:[#allocation8 + $0x1d0] sm:$0xff] }
 0x2c8   :  { %2129 = vmatprep.subr.bf16.mxu1 %v2128_v5  ;;  %v1222_v5 = vld [vmem:[#allocation8 + $0x1d8] sm:$0xff] }
 0x2c9   :  { %v2200_v6 = vpack.c.bf16 %v1222_v5, %v1221_v4  ;;  %v1235_v4 = vld [vmem:[#allocation8 + $0x240] sm:$0xff]  ;;  %v1236_v5 = vld [vmem:[#allocation8 + $0x248] sm:$0xff] }
 0x2cb   :  { %2131 = vmatpush1.bf16.msra.mxu1 %v2130_v9  ;;  %v1223_v9 = vld [vmem:[#allocation8 + $0x1e0] sm:$0xff] }
 0x2cc   :  { %2133 = vmatprep.subr.bf16.mxu1 %v2132_v10  ;;  %v1224_v10 = vld [vmem:[#allocation8 + $0x1e8] sm:$0xff] }
 0x2cd   :  { %v2204_v12 = vpack.c.bf16 %v1224_v10, %v1223_v9  ;;  %v1237_v10 = vld [vmem:[#allocation8 + $0x250] sm:$0xff] }
 0x2cf   :  { %2135 = vmatpush1.bf16.msra.mxu1 %v2134_v14  ;;  %v1226_v14 = vld [vmem:[#allocation8 + $0x1f8] sm:$0xff] }
 0x2d0   :  { %2137 = vmatprep.subr.bf16.mxu1 %v2136_v15  ;;  %v2206_v15 = vpack.c.bf16 %v1208_v13, %v1207_v11  ;;  %v2208_v16 = vpack.c.bf16 %v1226_v14, %v1225_v45  ;;  %v1238_v11 = vld [vmem:[#allocation8 + $0x258] sm:$0xff]  ;;  %v1256_v13 = vld [vmem:[#allocation8 + $0x2e8] sm:$0xff] }
 0x2d1   :  { %v2234_v14 = vpack.c.bf16 %v1238_v11, %v1237_v10  ;;  %v1272_v10 = vld [vmem:[#allocation8 + $0x368] sm:$0xff]  ;;  %v1289_v11 = vld [vmem:[#allocation8 + $0x3f0] sm:$0xff] }
 0x2d3   :  { %2139 = vmatpush1.bf16.msra.mxu1 %v2138_v20  ;;  %v1275_v20 = vld [vmem:[#allocation8 + $0x380] sm:$0xff] }
 0x2d4   :  { %2141 = vmatprep.subr.bf16.mxu1 %v2140_v21  ;;  %v1276_v21 = vld [vmem:[#allocation8 + $0x388] sm:$0xff] }
 0x2d5   :  { %v2244_v22 = vpack.c.bf16 %v1276_v21, %v1275_v20 }
 0x2d7   :  { %2143 = vmatpush1.bf16.msra.mxu1 %v2142_v27  ;;  %v838_v27 = vrot.slane %v2605_v23, %v2568_v36  ;;  %v1229_v36 = vld [vmem:[#allocation8 + $0x210] sm:$0xff] }
 0x2d8   :  { %2145 = vmatprep.subr.bf16.mxu1 %v2144_v28  ;;  %v854_v28 = vrot.slane %v2605_v23, %v853_v24  ;;  %v2218_v55 = vpack.c.bf16 %v1230_v49, %v1229_v36  ;;  %v1242_v24 = vld [vmem:[#allocation8 + $0x278] sm:$0xff]  ;;  %v1279_v36 = vld [vmem:[#allocation8 + $0x3a0] sm:$0xff]  ;;  %v1280_v49 = vld [vmem:[#allocation8 + $0x3a8] sm:$0xff] }
 0x2db   :  { %2147 = vmatpush1.bf16.msra.mxu1 %v2146_v33 }
 0x2dc   :  { %2181 = vmatprep.subr.bf16.mxu1 %v2180_v39 }
 0x2de   :  { %1149 = vmatmul.mubr.f32.vlgmr.msra.gmra.mrb[6].mxu1 %v2592_v31  ;;  %v1217_v31 = vld [vmem:[#allocation8 + $0x1b0] sm:$0xff] }
 0x2df   :  { %2183 = vmatpush3.bf16.msra.mxu1 %v2182_v43  ;;  %v2192_v59 = vpack.c.bf16 %v1218_v57, %v1217_v31  ;;  %v1228_v43 = vld [vmem:[#allocation8 + $0x208] sm:$0xff]  ;;  %v1231_v31 = vld [vmem:[#allocation8 + $0x220] sm:$0xff] }
 0x2e0   :  { %2185 = vmatprep.subr.bf16.mxu1 %v2184_v48  ;;  %v2214_v34 = vpack.c.bf16 %v1228_v43, %v1227_v42  ;;  %v2216_v48 = vpack.c.bf16 %v1246_v46, %v1245_v44  ;;  %v1232_v57 = vld [vmem:[#allocation8 + $0x228] sm:$0xff]  ;;  %v1277_v42 = vld [vmem:[#allocation8 + $0x390] sm:$0xff]  ;;  %v1278_v43 = vld [vmem:[#allocation8 + $0x398] sm:$0xff] }
 0x2e1   :  { %v2222_v60 = vpack.c.bf16 %v1232_v57, %v1231_v31  ;;  %v1265_v57 = vld [vmem:[#allocation8 + $0x330] sm:$0xff] }
 0x2e3   :  { %2187 = vmatpush3.bf16.msra.mxu1 %v2186_v53  ;;  %v1248_v53 = vld [vmem:[#allocation8 + $0x2a8] sm:$0xff] }
 0x2e4   :  { %2189 = vmatprep.subr.bf16.mxu1 %v2188_v54  ;;  %v2220_v56 = vpack.c.bf16 %v1248_v53, %v1247_v51  ;;  %v1263_v51 = vld [vmem:[#allocation8 + $0x320] sm:$0xff]  ;;  %v1264_v53 = vld [vmem:[#allocation8 + $0x328] sm:$0xff] }
 0x2e7   :  { %2191 = vmatpush3.bf16.msra.mxu1 %v2190_v58  ;;  %v1249_v58 = vld [vmem:[#allocation8 + $0x2b0] sm:$0xff] }
 0x2e8   :  { %2193 = vmatprep.subr.bf16.mxu1 %v2192_v59  ;;  %v1250_v59 = vld [vmem:[#allocation8 + $0x2b8] sm:$0xff] }
 0x2e9   :  { %v2224_v61 = vpack.c.bf16 %v1250_v59, %v1249_v58  ;;  %v1266_v58 = vld [vmem:[#allocation8 + $0x338] sm:$0xff]  ;;  %v1283_v59 = vld [vmem:[#allocation8 + $0x3c0] sm:$0xff] }
 0x2eb   :  { %2195 = vmatpush3.bf16.msra.mxu1 %v2194_v62  ;;  %v1233_v62 = vld [vmem:[#allocation8 + $0x230] sm:$0xff] }
 0x2ec   :  { %2197 = vmatprep.subr.bf16.mxu1 %v2196_v0  ;;  %v1252_v0 = vld [vmem:[#allocation8 + $0x2c8] sm:$0xff]  ;;  %v2226_v2 = vpack.c.bf16 %v1234_v26, %v1233_v62  ;;  %v1267_v26 = vld [vmem:[#allocation8 + $0x340] sm:$0xff] }
 0x2ef   :  { %2199 = vmatpush3.bf16.msra.mxu1 %v2198_v3  ;;  %v2228_v3 = vpack.c.bf16 %v1252_v0, %v1251_v63  ;;  %v1268_v63 = vld [vmem:[#allocation8 + $0x348] sm:$0xff]  ;;  %v1285_v0 = vld [vmem:[#allocation8 + $0x3d0] sm:$0xff] }
 0x2f0   :  { %2201 = vmatprep.subr.bf16.mxu1 %v2200_v6  ;;  %v1253_v6 = vld [vmem:[#allocation8 + $0x2d0] sm:$0xff] }
 0x2f1   :  { %v2232_v9 = vpack.c.bf16 %v1254_v7, %v1253_v6  ;;  %v1287_v6 = vld [vmem:[#allocation8 + $0x3e0] sm:$0xff]  ;;  %v1288_v7 = vld [vmem:[#allocation8 + $0x3e8] sm:$0xff] }
 0x2f3   :  { %2203 = vmatpush3.bf16.msra.mxu1 %v2202_v8  ;;  %v2230_v8 = vpack.c.bf16 %v1236_v5, %v1235_v4  ;;  %v1269_v4 = vld [vmem:[#allocation8 + $0x350] sm:$0xff]  ;;  %v1270_v5 = vld [vmem:[#allocation8 + $0x358] sm:$0xff] }
 0x2f4   :  { %2205 = vmatprep.subr.bf16.mxu1 %v2204_v12  ;;  %v1255_v12 = vld [vmem:[#allocation8 + $0x2e0] sm:$0xff] }
 0x2f7   :  { %2207 = vmatpush3.bf16.msra.mxu1 %v2206_v15  ;;  %v2236_v15 = vpack.c.bf16 %v1256_v13, %v1255_v12  ;;  %v1290_v12 = vld [vmem:[#allocation8 + $0x3f8] sm:$0xff] }
 0x2f8   :  { %2209 = vmatprep.subr.bf16.mxu1 %v2208_v16  ;;  %v1239_v16 = vld [vmem:[#allocation8 + $0x260] sm:$0xff] }
 0x2f9   :  { %v2238_v20 = vpack.c.bf16 %v1240_v17, %v1239_v16  ;;  %v857_v17 = vsub.s32 6, %v2557_v30 }
 0x2fb   :  { %2211 = vmatpush3.bf16.msra.mxu1 %v2210_v19  ;;  %v1258_v19 = vld [vmem:[#allocation8 + $0x2f8] sm:$0xff] }
 0x2fc   :  { %2245 = vmatprep.subr.bf16.mxu1 %v2244_v22  ;;  %v2240_v21 = vpack.c.bf16 %v1258_v19, %v1257_v18  ;;  %v1241_v22 = vld [vmem:[#allocation8 + $0x270] sm:$0xff]  ;;  %v861_v18 = vsub.s32 7, %v2557_v30  ;;  %v858_v19 = vrot.slane %v2605_v23, %v857_v17 }
 0x331   :  { %v937_v29 = vpop.f32.mrb[2].mxu1  ;;  %v1079_v32 = vpop.f32.mrb[4].mxu0 }
 0x332   :  { %v939_v33 = vpop.f32.mrb[3].mxu1  ;;  %v1081_v37 = vpop.f32.mrb[5].mxu0  ;;  %v938_v38 = vadd.f32 %v937_v29, %v834_v25  ;;  %v1080_v45 = vadd.f32 %v1079_v32, %v850_v35  ;;  %v2242_v25 = vpack.c.bf16 %v1242_v24, %v1241_v22  ;;  %v846_v29 = vrot.slane %v2605_v23, %v137_v40 }
 0x333   :  { %v940_v39 = vadd.f32 %v939_v33, %v838_v27  ;;  %v1082_v41 = vadd.f32 %v1081_v37, %v854_v28  ;;  %v842_v28 = vrot.slane %v2605_v23, %v133_v52  ;;  %v2266_v35 = vpack.c.bf16 %v1270_v5, %v1269_v4 }
 0x335   :  { %2306 = vtanh.f32 %v940_v39  ;;  %v1259_v39 = vld [vmem:[#allocation8 + $0x300] sm:$0xff] }
 0x336   :  { %2308 = vtanh.f32 %v938_v38 }
 0x337   :  { %2310 = vtanh.f32 %v1082_v41  ;;  %v1260_v41 = vld [vmem:[#allocation8 + $0x308] sm:$0xff] }
 0x338   :  { %2312 = vtanh.f32 %v1080_v45  ;;  %v2246_v44 = vpack.c.bf16 %v1260_v41, %v1259_v39  ;;  %v2272_v45 = vpack.c.bf16 %v1290_v12, %v1289_v11 }
 0x33f   :  { %v2307_v47 = vpop.eup %2306 }
 0x340   :  { %v2309_v50 = vpop.eup %2308  ;;  %1362 = vmatprep.mubr.f32.mxu0 %v2307_v47  ;;  %v1261_v47 = vld [vmem:[#allocation8 + $0x310] sm:$0xff] }
 0x341   :  { %v2311_v54 = vpop.eup %2310  ;;  %1363 = vmatmul.mubr.f32.vlgmr.msra.gmra.mrb[6].mxu0 %v2309_v50  ;;  %v2252_v50 = vpack.c.bf16 %v1280_v49, %v1279_v36 }
 0x342   :  { %2215 = vmatpush3.bf16.msra.mxu0 %v2214_v34  ;;  %1502 = vmatprep.mubr.f32.mxu0 %v2311_v54  ;;  %v2313_v27 = vpop.eup %2312  ;;  %v2248_v34 = vpack.c.bf16 %v1278_v43, %v1277_v42  ;;  %v1281_v54 = vld [vmem:[#allocation8 + $0x3b0] sm:$0xff] }
 0x343   :  { %2217 = vmatprep.subr.bf16.mxu0 %v2216_v48  ;;  %v1262_v48 = vld [vmem:[#allocation8 + $0x318] sm:$0xff] }
 0x344   :  { %v2250_v40 = vpack.c.bf16 %v1262_v48, %v1261_v47 }
 0x346   :  { %2219 = vmatpush3.bf16.msra.mxu0 %v2218_v55  ;;  %v1282_v55 = vld [vmem:[#allocation8 + $0x3b8] sm:$0xff] }
 0x347   :  { %2221 = vmatprep.subr.bf16.mxu0 %v2220_v56  ;;  %v2254_v56 = vpack.c.bf16 %v1264_v53, %v1263_v51  ;;  %v2256_v31 = vpack.c.bf16 %v1282_v55, %v1281_v54 }
 0x34a   :  { %2223 = vmatpush3.bf16.msra.mxu0 %v2222_v60  ;;  %v1284_v60 = vld [vmem:[#allocation8 + $0x3c8] sm:$0xff] }
 0x34b   :  { %2225 = vmatprep.subr.bf16.mxu0 %v2224_v61  ;;  %v2258_v61 = vpack.c.bf16 %v1266_v58, %v1265_v57  ;;  %v2260_v62 = vpack.c.bf16 %v1284_v60, %v1283_v59 }
 0x34e   :  { %2227 = vmatpush3.bf16.msra.mxu0 %v2226_v2  ;;  %v2262_v2 = vpack.c.bf16 %v1268_v63, %v1267_v26 }
 0x34f   :  { %2229 = vmatprep.subr.bf16.mxu0 %v2228_v3  ;;  %v2264_v3 = vpack.c.bf16 %v1286_v1, %v1285_v0 }
 0x352   :  { %2231 = vmatpush3.bf16.msra.mxu0 %v2230_v8  ;;  %v2268_v8 = vpack.c.bf16 %v1288_v7, %v1287_v6 }
 0x353   :  { %2233 = vmatprep.subr.bf16.mxu0 %v2232_v9  ;;  %v1271_v9 = vld [vmem:[#allocation8 + $0x360] sm:$0xff] }
 0x354   :  { %v2270_v13 = vpack.c.bf16 %v1272_v10, %v1271_v9 }
 0x356   :  { %2235 = vmatpush3.bf16.msra.mxu0 %v2234_v14  ;;  %v1273_v14 = vld [vmem:[#allocation8 + $0x370] sm:$0xff] }
 0x357   :  { %2237 = vmatprep.subr.bf16.mxu0 %v2236_v15  ;;  %v1274_v15 = vld [vmem:[#allocation8 + $0x378] sm:$0xff] }
 0x358   :  { %v2274_v16 = vpack.c.bf16 %v1274_v15, %v1273_v14 }
 0x35a   :  { %2239 = vmatpush3.bf16.msra.mxu0 %v2238_v20  ;;  %v862_v20 = vrot.slane %v2605_v23, %v861_v18  ;;  %v1599_v23 = vld [vmem:[%s2648_s8] ss:$0 sm:$0xff] }
 0x35b   :  { %2241 = vmatprep.subr.bf16.mxu0 %v2240_v21 }
 0x35e   :  { %2243 = vmatpush3.bf16.msra.mxu0 %v2242_v25 }
 0x361   :  { %1503 = vmatmul.mubr.f32.vlgmr.msra.gmra.mrb[8].mxu0 %v2313_v27 }
 0x371   :  { %v1008_v32 = vpop.f32.mrb[4].mxu1 }
 0x372   :  { %v1009_v33 = vadd.f32 %v1008_v32, %v842_v28  ;;  %v1010_v37 = vpop.f32.mrb[5].mxu1 }
 0x373   :  { %v1011_v38 = vadd.f32 %v1010_v37, %v846_v29 }
 0x375   :  { %2314 = vtanh.f32 %v1011_v38 }
 0x376   :  { %2316 = vtanh.f32 %v1009_v33 }
 0x37f   :  { %v2315_v46 = vpop.eup %2314 }
 0x380   :  { %v2317_v52 = vpop.eup %2316  ;;  %1432 = vmatprep.mubr.f32.mxu1 %v2315_v46 }
 0x381   :  { %1433 = vmatmul.mubr.f32.vlgmr.msra.gmra.mrb[8].mxu1 %v2317_v52 }
 0x382   :  { %2247 = vmatpush3.bf16.msra.mxu1 %v2246_v44 }
 0x383   :  { %2249 = vmatprep.subr.bf16.mxu1 %v2248_v34 }
 0x386   :  { %2251 = vmatpush3.bf16.msra.mxu1 %v2250_v40 }
 0x387   :  { %2253 = vmatprep.subr.bf16.mxu1 %v2252_v50 }
 0x38a   :  { %2255 = vmatpush3.bf16.msra.mxu1 %v2254_v56 }
 0x38b   :  { %2257 = vmatprep.subr.bf16.mxu1 %v2256_v31 }
 0x38e   :  { %2259 = vmatpush3.bf16.msra.mxu1 %v2258_v61 }
 0x38f   :  { %2261 = vmatprep.subr.bf16.mxu1 %v2260_v62 }
 0x392   :  { %2263 = vmatpush3.bf16.msra.mxu1 %v2262_v2 }
 0x393   :  { %2265 = vmatprep.subr.bf16.mxu1 %v2264_v3 }
 0x396   :  { %2267 = vmatpush3.bf16.msra.mxu1 %v2266_v35 }
 0x397   :  { %2269 = vmatprep.subr.bf16.mxu1 %v2268_v8 }
 0x39a   :  { %2271 = vmatpush3.bf16.msra.mxu1 %v2270_v13 }
 0x39b   :  { %2273 = vmatprep.subr.bf16.mxu1 %v2272_v45 }
 0x39e   :  { %2275 = vmatpush3.bf16.msra.mxu1 %v2274_v16 }
 0x3b1   :  { %v1150_v21 = vpop.f32.mrb[6].mxu1 }
 0x3b2   :  { %v1151_v22 = vadd.f32 %v1150_v21, %v858_v19  ;;  %v1152_v24 = vpop.f32.mrb[7].mxu1 }
 0x3b3   :  { %v1153_v25 = vadd.f32 %v1152_v24, %v862_v20 }
 0x3b5   :  { %2318 = vtanh.f32 %v1153_v25 }
 0x3b6   :  { %2320 = vtanh.f32 %v1151_v22 }
 0x3bf   :  { %v2319_v27 = vpop.eup %2318 }
 0x3c0   :  { %v2321_v28 = vpop.eup %2320  ;;  %1572 = vmatprep.mubr.f32.mxu1 %v2319_v27 }
 0x3c1   :  { %1573 = vmatmul.mubr.f32.vlgmr.msra.gmra.mrb[10].mxu1 %v2321_v28 }
 0x414   :  { %v1632_v29 = vpop.f32.mrb[6].mxu0 }
 0x415   :  { %v1633_v32 = vpop.f32.mrb[7].mxu0 }
 0x416   :  { %v1634_v33 = vadd.f32 %v1633_v32, %v1632_v29 }
 0x418   :  { %v1365_v42 = vadd.f32 %v1634_v33, %v1599_v23 }
 0x434   :  { %v1702_v37 = vpop.f32.mrb[8].mxu0 }
 0x435   :  { %v1703_v38 = vpop.f32.mrb[9].mxu0 }
 0x436   :  { %v1704_v30 = vadd.f32 %v1703_v38, %v1702_v37 }
 0x454   :  { %v1667_v39 = vpop.f32.mrb[8].mxu1 }
 0x455   :  { %v1668_v41 = vpop.f32.mrb[9].mxu1 }
 0x456   :  { %v1669_v43 = vadd.f32 %v1668_v41, %v1667_v39 }
 0x458   :  { %v1435_v44 = vadd.f32 %v1669_v43, %v1365_v42 }
 0x45a   :  { %v1505_v46 = vadd.f32 %v1704_v30, %v1435_v44 }
 0x494   :  { %v1737_v34 = vpop.f32.mrb[10].mxu1 }
 0x495   :  { %v1738_v47 = vpop.f32.mrb[11].mxu1 }
 0x496   :  { %v1739_v48 = vadd.f32 %v1738_v47, %v1737_v34 }
 0x498   :  { %v1575_v52 = vadd.f32 %v1739_v48, %v1505_v46 }
 0x49a   :  { %1578 = vst [vmem:[#allocation10] sm:$0x3] %v1575_v52 }
 0x49b   :  { %2421 = shalt.err (!%p2418_p8)
}
 0x49c   :  { %s2422_s27 = scalar_lea.hbm %s2649_s9, 32 }
 0x49d   :  { %p2423_p9 = scmp.ne.s32.totalorder %s2649_s9, %s2422_s27  ;;  %p2426_p10 = scmp.lt.u32.totalorder %s2422_s27, %s2649_s9 }
 0x49f   :  { %p2428_p11 = pnand %p2426_p10, %p2423_p9 }
 0x4a1   :  { %2431 = shalt.err (!%p2428_p11)
}
 0x4a2   :  { %1588 = dma.vmem_to_hbm [thread:$0]  %s1586_s1, 32, %s2649_s9, [#allocation4]  }
 0x4a3   :  { %2438 = dma.done.wait [#allocation4], 32  }
 0x4a4   :  { %2439 = vsyncadd [#allocation4], 4294967264 }
 0x4a5   :  { %1592 = vsyncpa [#allocation3], 1 }
 0x4a6   :  { %1593 = vsyncpa [#allocation6], 1 }
 0x4a7   :  { %1594 = vsyncpa [#allocation9], 1 }
 0x4a8   :  { %1595 = vsyncpa [#allocation4], 1 }

</bundles_post_ra>
